<compile_context>
chip_gen: v6e
topology: v6e:2x2x1
jax: 0.10.0
libtpu: 0.0.40
codegen_flags: <defaults>
</compile_context>

<pallas_src>
import functools

import jax
import jax.numpy as jnp
from jax.experimental import pallas as pl
from jax.experimental.pallas import tpu as pltpu


def _sep_conv_kernel(x_ref, dw_ref, pw_ref, o_ref, xpad_ref, *,
                     kh_size, kw_size, stride, padding,
                     c_in, c_out, h_in, w_in, h_out, w_out):
    # x_ref   : (1, C_in, H, W)        one batch element (VMEM, auto-pipelined)
    # dw_ref  : (C_in*KH*KW,)  f32     depthwise weights, flat, in SMEM
    # pw_ref  : (C_out*C_in,)  f32     pointwise weights, flat, in SMEM
    # o_ref   : (1, C_out, H_out, W_out)
    # xpad_ref: (C_in, H+2p, W+2p)     VMEM scratch for the padded activation

    # ------------------------------------------------------------------
    # 1) Build the zero-padded input in VMEM (fused padding: no padded copy
    #    of the activation in HBM).  Fully rewritten every grid step, so
    #    there is no cross-step scratch state (megacore safe).
    # ------------------------------------------------------------------
    if padding > 0:
        xpad_ref[...] = jnp.zeros(xpad_ref.shape, xpad_ref.dtype)
    xpad_ref[:, padding:padding + h_in, padding:padding + w_in] = x_ref[0]

    def _win(k0, size):
        # Window of input positions feeding all output positions for tap k0.
        if stride == 1:
            return pl.ds(k0, size)
        # TODO(synk): stride > 1 uses strided VMEM-ref loads; validate the
        # lowering cost / consider phase decomposition for production strides.
        return pl.ds(k0, size, stride)

    # ------------------------------------------------------------------
    # 2) Depthwise conv: per-channel (H_out, W_out) plane, unrolled KH*KW
    #    taps, f32 accumulation.  Weights are f32 scalars from SMEM, so the
    #    tap loop has no vector broadcasts and no per-tap activation casts.
    # ------------------------------------------------------------------
    dw_planes = []
    for ci in range(c_in):
        acc = None
        for kh in range(kh_size):
            for kw in range(kw_size):
                patch = xpad_ref[ci, _win(kh, h_out), _win(kw, w_out)]
                w = dw_ref[(ci * kh_size + kh) * kw_size + kw]   # f32 scalar
                term = patch * w            # promoted to f32 accumulation
                acc = term if acc is None else acc + term
        dw_planes.append(acc)

    # ------------------------------------------------------------------
    # 3) Pointwise 1x1 conv: VPU broadcast-MACs with SMEM scalar weights
    #    (channel counts are far too small to feed the MXU usefully).
    #    Stores are full (H_out, W_out) planes with W_out on the lane axis.
    # ------------------------------------------------------------------
    for co in range(c_out):
        out = None
        for ci in range(c_in):
            term = dw_planes[ci] * pw_ref[co * c_in + ci]        # f32 scalar
            out = term if out is None else out + term
        o_ref[0, co] = out.astype(o_ref.dtype)


def separable_conv(x_nchw, dw_weight, pw_weight, *, stride, padding):
    """Forward pass of SeparableConv (NCHW in, NCHW out, bias=False).

    x_nchw:    (N, C_in, H, W)
    dw_weight: (C_in, KH, KW)  == torch depthwise weight (C_in, 1, KH, KW) squeezed
    pw_weight: (C_out, C_in)   == torch pointwise weight (C_out, C_in, 1, 1) squeezed
    returns:   (N, C_out, H_out, W_out)
    """
    n, c_in, h, w = x_nchw.shape
    wc_in, kh_size, kw_size = dw_weight.shape
    c_out, pc_in = pw_weight.shape
    assert wc_in == c_in and pc_in == c_in

    h_out = (h + 2 * padding - kh_size) // stride + 1
    w_out = (w + 2 * padding - kw_size) // stride + 1
    hp = h + 2 * padding
    wp = w + 2 * padding

    # Tiny weight tensors live in SMEM as flat 1-D f32 scalars (flat to avoid
    # the SMEM (8,128) padding blow-up for multi-dim arrays).
    dw_flat = dw_weight.astype(jnp.float32).reshape(-1)
    pw_flat = pw_weight.astype(jnp.float32).reshape(-1)

    kernel = functools.partial(
        _sep_conv_kernel,
        kh_size=kh_size, kw_size=kw_size, stride=stride, padding=padding,
        c_in=c_in, c_out=c_out, h_in=h, w_in=w, h_out=h_out, w_out=w_out,
    )

    return pl.pallas_call(
        kernel,
        out_shape=jax.ShapeDtypeStruct((n, c_out, h_out, w_out), x_nchw.dtype),
        grid_spec=pltpu.PrefetchScalarGridSpec(
            num_scalar_prefetch=0,
            grid=(n,),
            in_specs=[
                # One batch element per grid step.  (H, W) are full-extent so
                # the (8,128) block rule is satisfied; W is the lane axis.
                pl.BlockSpec((1, c_in, h, w), lambda b: (b, 0, 0, 0)),
                pl.BlockSpec(memory_space=pltpu.MemorySpace.SMEM),
                pl.BlockSpec(memory_space=pltpu.MemorySpace.SMEM),
            ],
            out_specs=pl.BlockSpec((1, c_out, h_out, w_out),
                                   lambda b: (b, 0, 0, 0)),
            scratch_shapes=[pltpu.VMEM((c_in, hp, wp), x_nchw.dtype)],
        ),
        compiler_params=pltpu.CompilerParams(
            dimension_semantics=("parallel",),
            vmem_limit_bytes=32 * 1024 * 1024,
        ),
    )(x_nchw, dw_flat, pw_flat)


def _reference(x_nchw, dw_weight, pw_weight, *, stride, padding):
    """Pure-JAX reference (lax conv) for correctness check."""
    c_in = x_nchw.shape[1]
    dw_oihw = dw_weight[:, None, :, :]                  # (C_in, 1, KH, KW)
    y = jax.lax.conv_general_dilated(
        x_nchw, dw_oihw,
        window_strides=(stride, stride),
        padding=[(padding, padding), (padding, padding)],
        dimension_numbers=("NCHW", "OIHW", "NCHW"),
        feature_group_count=c_in,
    )
    pw_oihw = pw_weight[:, :, None, None]               # (C_out, C_in, 1, 1)
    return jax.lax.conv_general_dilated(
        y, pw_oihw,
        window_strides=(1, 1),
        padding=[(0, 0), (0, 0)],
        dimension_numbers=("NCHW", "OIHW", "NCHW"),
    )


if __name__ == "__main__":
    key = jax.random.PRNGKey(0)
    k_x, k_dw, k_pw = jax.random.split(key, 3)

    N, C_in, H, W = 2, 4, 16, 16
    C_out, K, STRIDE, PAD = 8, 3, 1, 1

    x = jax.random.normal(k_x, (N, C_in, H, W), dtype=jnp.float32)
    # torch depthwise weight (C_in, 1, K, K) -> stored here as (C_in, K, K)
    dw_weight = jax.random.normal(k_dw, (C_in, K, K), dtype=jnp.float32) * 0.1
    # torch pointwise weight (C_out, C_in, 1, 1) -> stored here as (C_out, C_in)
    pw_weight = jax.random.normal(k_pw, (C_out, C_in), dtype=jnp.float32) * 0.1

    out = separable_conv(x, dw_weight, pw_weight, stride=STRIDE, padding=PAD)
    out = jax.block_until_ready(out)

    ref = _reference(x, dw_weight, pw_weight, stride=STRIDE, padding=PAD)
    assert out.shape == (N, C_out, H, W), out.shape
    assert jnp.allclose(out, ref, atol=1e-4, rtol=1e-4), "mismatch vs reference"

    print("KERNEL_OK")
</pallas_src>

<mosaic_0001>
module attributes {stable_mosaic.version = 11 : i64} {
  func.func @_sep_conv_kernel(%arg0: i32, %arg1: memref<1x4x16x16xf32, #tpu.memory_space<vmem>>, %arg2: memref<36xf32, #tpu.memory_space<smem>>, %arg3: memref<32xf32, #tpu.memory_space<smem>>, %arg4: memref<1x8x16x16xf32, #tpu.memory_space<vmem>>, %arg5: memref<4x18x18xf32, #tpu.memory_space<vmem>>) attributes {dimension_semantics = [#tpu.dimension_semantics<parallel>], iteration_bounds = array<i64: 2>, scalar_prefetch = 0 : i64, scratch_operands = 1 : i64, tpu.core_type = #tpu.core_type<tc>, window_params = [{transform_indices = @transform_0, window_bounds = array<i64: 1, 4, 16, 16>}, {transform_indices = @transform_1, window_bounds = array<i64: 36>}, {transform_indices = @transform_2, window_bounds = array<i64: 32>}, {transform_indices = @transform_3, window_bounds = array<i64: 1, 8, 16, 16>}]} {
    %cst = arith.constant 0.000000e+00 : f32
    %0 = vector.broadcast %cst : f32 to vector<4x18x18xf32>
    %c0 = arith.constant 0 : index
    %c0_0 = arith.constant 0 : index
    %c0_1 = arith.constant 0 : index
    %1 = vector.load %arg5[%c0, %c0_0, %c0_1] : memref<4x18x18xf32, #tpu.memory_space<vmem>>, vector<4x18x18xf32>
    tpu.vector_store %arg5[%c0, %c0_0, %c0_1], %0 {strides = array<i32>} : memref<4x18x18xf32, #tpu.memory_space<vmem>>, vector<4x18x18xf32>,
    %c0_2 = arith.constant 0 : index
    %c0_3 = arith.constant 0 : index
    %c0_4 = arith.constant 0 : index
    %c0_5 = arith.constant 0 : index
    %2 = vector.load %arg1[%c0_2, %c0_3, %c0_4, %c0_5] : memref<1x4x16x16xf32, #tpu.memory_space<vmem>>, vector<1x4x16x16xf32>
    %3 = vector.shape_cast %2 : vector<1x4x16x16xf32> to vector<4x16x16xf32>
    %c0_6 = arith.constant 0 : index
    %c1 = arith.constant 1 : index
    %c1_7 = arith.constant 1 : index
    %4 = vector.load %arg5[%c0_6, %c1, %c1_7] : memref<4x18x18xf32, #tpu.memory_space<vmem>>, vector<4x16x16xf32>
    tpu.vector_store %arg5[%c0_6, %c1, %c1_7], %3 {strides = array<i32>} : memref<4x18x18xf32, #tpu.memory_space<vmem>>, vector<4x16x16xf32>,
    %c0_8 = arith.constant 0 : index
    %c0_9 = arith.constant 0 : index
    %c0_10 = arith.constant 0 : index
    %5 = vector.load %arg5[%c0_8, %c0_9, %c0_10] : memref<4x18x18xf32, #tpu.memory_space<vmem>>, vector<1x16x16xf32>
    %6 = vector.shape_cast %5 : vector<1x16x16xf32> to vector<16x16xf32>
    %c0_11 = arith.constant 0 : index
    %7 = memref.load %arg2[%c0_11] : memref<36xf32, #tpu.memory_space<smem>>
    %8 = vector.broadcast %7 : f32 to vector<16x16xf32>
    %9 = arith.mulf %6, %8 : vector<16x16xf32>
    %c0_12 = arith.constant 0 : index
    %c0_13 = arith.constant 0 : index
    %c1_14 = arith.constant 1 : index
    %10 = vector.load %arg5[%c0_12, %c0_13, %c1_14] : memref<4x18x18xf32, #tpu.memory_space<vmem>>, vector<1x16x16xf32>
    %11 = vector.shape_cast %10 : vector<1x16x16xf32> to vector<16x16xf32>
    %c1_15 = arith.constant 1 : index
    %12 = memref.load %arg2[%c1_15] : memref<36xf32, #tpu.memory_space<smem>>
    %13 = vector.broadcast %12 : f32 to vector<16x16xf32>
    %14 = arith.mulf %11, %13 : vector<16x16xf32>
    %15 = arith.addf %9, %14 : vector<16x16xf32>
    %c0_16 = arith.constant 0 : index
    %c0_17 = arith.constant 0 : index
    %c2 = arith.constant 2 : index
    %16 = vector.load %arg5[%c0_16, %c0_17, %c2] : memref<4x18x18xf32, #tpu.memory_space<vmem>>, vector<1x16x16xf32>
    %17 = vector.shape_cast %16 : vector<1x16x16xf32> to vector<16x16xf32>
    %c2_18 = arith.constant 2 : index
    %18 = memref.load %arg2[%c2_18] : memref<36xf32, #tpu.memory_space<smem>>
    %19 = vector.broadcast %18 : f32 to vector<16x16xf32>
    %20 = arith.mulf %17, %19 : vector<16x16xf32>
    %21 = arith.addf %15, %20 : vector<16x16xf32>
    %c0_19 = arith.constant 0 : index
    %c1_20 = arith.constant 1 : index
    %c0_21 = arith.constant 0 : index
    %22 = vector.load %arg5[%c0_19, %c1_20, %c0_21] : memref<4x18x18xf32, #tpu.memory_space<vmem>>, vector<1x16x16xf32>
    %23 = vector.shape_cast %22 : vector<1x16x16xf32> to vector<16x16xf32>
    %c3 = arith.constant 3 : index
    %24 = memref.load %arg2[%c3] : memref<36xf32, #tpu.memory_space<smem>>
    %25 = vector.broadcast %24 : f32 to vector<16x16xf32>
    %26 = arith.mulf %23, %25 : vector<16x16xf32>
    %27 = arith.addf %21, %26 : vector<16x16xf32>
    %c0_22 = arith.constant 0 : index
    %c1_23 = arith.constant 1 : index
    %c1_24 = arith.constant 1 : index
    %28 = vector.load %arg5[%c0_22, %c1_23, %c1_24] : memref<4x18x18xf32, #tpu.memory_space<vmem>>, vector<1x16x16xf32>
    %29 = vector.shape_cast %28 : vector<1x16x16xf32> to vector<16x16xf32>
    %c4 = arith.constant 4 : index
    %30 = memref.load %arg2[%c4] : memref<36xf32, #tpu.memory_space<smem>>
    %31 = vector.broadcast %30 : f32 to vector<16x16xf32>
    %32 = arith.mulf %29, %31 : vector<16x16xf32>
    %33 = arith.addf %27, %32 : vector<16x16xf32>
    %c0_25 = arith.constant 0 : index
    %c1_26 = arith.constant 1 : index
    %c2_27 = arith.constant 2 : index
    %34 = vector.load %arg5[%c0_25, %c1_26, %c2_27] : memref<4x18x18xf32, #tpu.memory_space<vmem>>, vector<1x16x16xf32>
    %35 = vector.shape_cast %34 : vector<1x16x16xf32> to vector<16x16xf32>
    %c5 = arith.constant 5 : index
    %36 = memref.load %arg2[%c5] : memref<36xf32, #tpu.memory_space<smem>>
    %37 = vector.broadcast %36 : f32 to vector<16x16xf32>
    %38 = arith.mulf %35, %37 : vector<16x16xf32>
    %39 = arith.addf %33, %38 : vector<16x16xf32>
    %c0_28 = arith.constant 0 : index
    %c2_29 = arith.constant 2 : index
    %c0_30 = arith.constant 0 : index
    %40 = vector.load %arg5[%c0_28, %c2_29, %c0_30] : memref<4x18x18xf32, #tpu.memory_space<vmem>>, vector<1x16x16xf32>
    %41 = vector.shape_cast %40 : vector<1x16x16xf32> to vector<16x16xf32>
    %c6 = arith.constant 6 : index
    %42 = memref.load %arg2[%c6] : memref<36xf32, #tpu.memory_space<smem>>
    %43 = vector.broadcast %42 : f32 to vector<16x16xf32>
    %44 = arith.mulf %41, %43 : vector<16x16xf32>
    %45 = arith.addf %39, %44 : vector<16x16xf32>
    %c0_31 = arith.constant 0 : index
    %c2_32 = arith.constant 2 : index
    %c1_33 = arith.constant 1 : index
    %46 = vector.load %arg5[%c0_31, %c2_32, %c1_33] : memref<4x18x18xf32, #tpu.memory_space<vmem>>, vector<1x16x16xf32>
    %47 = vector.shape_cast %46 : vector<1x16x16xf32> to vector<16x16xf32>
    %c7 = arith.constant 7 : index
    %48 = memref.load %arg2[%c7] : memref<36xf32, #tpu.memory_space<smem>>
    %49 = vector.broadcast %48 : f32 to vector<16x16xf32>
    %50 = arith.mulf %47, %49 : vector<16x16xf32>
    %51 = arith.addf %45, %50 : vector<16x16xf32>
    %c0_34 = arith.constant 0 : index
    %c2_35 = arith.constant 2 : index
    %c2_36 = arith.constant 2 : index
    %52 = vector.load %arg5[%c0_34, %c2_35, %c2_36] : memref<4x18x18xf32, #tpu.memory_space<vmem>>, vector<1x16x16xf32>
    %53 = vector.shape_cast %52 : vector<1x16x16xf32> to vector<16x16xf32>
    %c8 = arith.constant 8 : index
    %54 = memref.load %arg2[%c8] : memref<36xf32, #tpu.memory_space<smem>>
    %55 = vector.broadcast %54 : f32 to vector<16x16xf32>
    %56 = arith.mulf %53, %55 : vector<16x16xf32>
    %57 = arith.addf %51, %56 : vector<16x16xf32>
    %c1_37 = arith.constant 1 : index
    %c0_38 = arith.constant 0 : index
    %c0_39 = arith.constant 0 : index
    %58 = vector.load %arg5[%c1_37, %c0_38, %c0_39] : memref<4x18x18xf32, #tpu.memory_space<vmem>>, vector<1x16x16xf32>
    %59 = vector.shape_cast %58 : vector<1x16x16xf32> to vector<16x16xf32>
    %c9 = arith.constant 9 : index
    %60 = memref.load %arg2[%c9] : memref<36xf32, #tpu.memory_space<smem>>
    %61 = vector.broadcast %60 : f32 to vector<16x16xf32>
    %62 = arith.mulf %59, %61 : vector<16x16xf32>
    %c1_40 = arith.constant 1 : index
    %c0_41 = arith.constant 0 : index
    %c1_42 = arith.constant 1 : index
    %63 = vector.load %arg5[%c1_40, %c0_41, %c1_42] : memref<4x18x18xf32, #tpu.memory_space<vmem>>, vector<1x16x16xf32>
    %64 = vector.shape_cast %63 : vector<1x16x16xf32> to vector<16x16xf32>
    %c10 = arith.constant 10 : index
    %65 = memref.load %arg2[%c10] : memref<36xf32, #tpu.memory_space<smem>>
    %66 = vector.broadcast %65 : f32 to vector<16x16xf32>
    %67 = arith.mulf %64, %66 : vector<16x16xf32>
    %68 = arith.addf %62, %67 : vector<16x16xf32>
    %c1_43 = arith.constant 1 : index
    %c0_44 = arith.constant 0 : index
    %c2_45 = arith.constant 2 : index
    %69 = vector.load %arg5[%c1_43, %c0_44, %c2_45] : memref<4x18x18xf32, #tpu.memory_space<vmem>>, vector<1x16x16xf32>
    %70 = vector.shape_cast %69 : vector<1x16x16xf32> to vector<16x16xf32>
    %c11 = arith.constant 11 : index
    %71 = memref.load %arg2[%c11] : memref<36xf32, #tpu.memory_space<smem>>
    %72 = vector.broadcast %71 : f32 to vector<16x16xf32>
    %73 = arith.mulf %70, %72 : vector<16x16xf32>
    %74 = arith.addf %68, %73 : vector<16x16xf32>
    %c1_46 = arith.constant 1 : index
    %c1_47 = arith.constant 1 : index
    %c0_48 = arith.constant 0 : index
    %75 = vector.load %arg5[%c1_46, %c1_47, %c0_48] : memref<4x18x18xf32, #tpu.memory_space<vmem>>, vector<1x16x16xf32>
    %76 = vector.shape_cast %75 : vector<1x16x16xf32> to vector<16x16xf32>
    %c12 = arith.constant 12 : index
    %77 = memref.load %arg2[%c12] : memref<36xf32, #tpu.memory_space<smem>>
    %78 = vector.broadcast %77 : f32 to vector<16x16xf32>
    %79 = arith.mulf %76, %78 : vector<16x16xf32>
    %80 = arith.addf %74, %79 : vector<16x16xf32>
    %c1_49 = arith.constant 1 : index
    %c1_50 = arith.constant 1 : index
    %c1_51 = arith.constant 1 : index
    %81 = vector.load %arg5[%c1_49, %c1_50, %c1_51] : memref<4x18x18xf32, #tpu.memory_space<vmem>>, vector<1x16x16xf32>
    %82 = vector.shape_cast %81 : vector<1x16x16xf32> to vector<16x16xf32>
    %c13 = arith.constant 13 : index
    %83 = memref.load %arg2[%c13] : memref<36xf32, #tpu.memory_space<smem>>
    %84 = vector.broadcast %83 : f32 to vector<16x16xf32>
    %85 = arith.mulf %82, %84 : vector<16x16xf32>
    %86 = arith.addf %80, %85 : vector<16x16xf32>
    %c1_52 = arith.constant 1 : index
    %c1_53 = arith.constant 1 : index
    %c2_54 = arith.constant 2 : index
    %87 = vector.load %arg5[%c1_52, %c1_53, %c2_54] : memref<4x18x18xf32, #tpu.memory_space<vmem>>, vector<1x16x16xf32>
    %88 = vector.shape_cast %87 : vector<1x16x16xf32> to vector<16x16xf32>
    %c14 = arith.constant 14 : index
    %89 = memref.load %arg2[%c14] : memref<36xf32, #tpu.memory_space<smem>>
    %90 = vector.broadcast %89 : f32 to vector<16x16xf32>
    %91 = arith.mulf %88, %90 : vector<16x16xf32>
    %92 = arith.addf %86, %91 : vector<16x16xf32>
    %c1_55 = arith.constant 1 : index
    %c2_56 = arith.constant 2 : index
    %c0_57 = arith.constant 0 : index
    %93 = vector.load %arg5[%c1_55, %c2_56, %c0_57] : memref<4x18x18xf32, #tpu.memory_space<vmem>>, vector<1x16x16xf32>
    %94 = vector.shape_cast %93 : vector<1x16x16xf32> to vector<16x16xf32>
    %c15 = arith.constant 15 : index
    %95 = memref.load %arg2[%c15] : memref<36xf32, #tpu.memory_space<smem>>
    %96 = vector.broadcast %95 : f32 to vector<16x16xf32>
    %97 = arith.mulf %94, %96 : vector<16x16xf32>
    %98 = arith.addf %92, %97 : vector<16x16xf32>
    %c1_58 = arith.constant 1 : index
    %c2_59 = arith.constant 2 : index
    %c1_60 = arith.constant 1 : index
    %99 = vector.load %arg5[%c1_58, %c2_59, %c1_60] : memref<4x18x18xf32, #tpu.memory_space<vmem>>, vector<1x16x16xf32>
    %100 = vector.shape_cast %99 : vector<1x16x16xf32> to vector<16x16xf32>
    %c16 = arith.constant 16 : index
    %101 = memref.load %arg2[%c16] : memref<36xf32, #tpu.memory_space<smem>>
    %102 = vector.broadcast %101 : f32 to vector<16x16xf32>
    %103 = arith.mulf %100, %102 : vector<16x16xf32>
    %104 = arith.addf %98, %103 : vector<16x16xf32>
    %c1_61 = arith.constant 1 : index
    %c2_62 = arith.constant 2 : index
    %c2_63 = arith.constant 2 : index
    %105 = vector.load %arg5[%c1_61, %c2_62, %c2_63] : memref<4x18x18xf32, #tpu.memory_space<vmem>>, vector<1x16x16xf32>
    %106 = vector.shape_cast %105 : vector<1x16x16xf32> to vector<16x16xf32>
    %c17 = arith.constant 17 : index
    %107 = memref.load %arg2[%c17] : memref<36xf32, #tpu.memory_space<smem>>
    %108 = vector.broadcast %107 : f32 to vector<16x16xf32>
    %109 = arith.mulf %106, %108 : vector<16x16xf32>
    %110 = arith.addf %104, %109 : vector<16x16xf32>
    %c2_64 = arith.constant 2 : index
    %c0_65 = arith.constant 0 : index
    %c0_66 = arith.constant 0 : index
    %111 = vector.load %arg5[%c2_64, %c0_65, %c0_66] : memref<4x18x18xf32, #tpu.memory_space<vmem>>, vector<1x16x16xf32>
    %112 = vector.shape_cast %111 : vector<1x16x16xf32> to vector<16x16xf32>
    %c18 = arith.constant 18 : index
    %113 = memref.load %arg2[%c18] : memref<36xf32, #tpu.memory_space<smem>>
    %114 = vector.broadcast %113 : f32 to vector<16x16xf32>
    %115 = arith.mulf %112, %114 : vector<16x16xf32>
    %c2_67 = arith.constant 2 : index
    %c0_68 = arith.constant 0 : index
    %c1_69 = arith.constant 1 : index
    %116 = vector.load %arg5[%c2_67, %c0_68, %c1_69] : memref<4x18x18xf32, #tpu.memory_space<vmem>>, vector<1x16x16xf32>
    %117 = vector.shape_cast %116 : vector<1x16x16xf32> to vector<16x16xf32>
    %c19 = arith.constant 19 : index
    %118 = memref.load %arg2[%c19] : memref<36xf32, #tpu.memory_space<smem>>
    %119 = vector.broadcast %118 : f32 to vector<16x16xf32>
    %120 = arith.mulf %117, %119 : vector<16x16xf32>
    %121 = arith.addf %115, %120 : vector<16x16xf32>
    %c2_70 = arith.constant 2 : index
    %c0_71 = arith.constant 0 : index
    %c2_72 = arith.constant 2 : index
    %122 = vector.load %arg5[%c2_70, %c0_71, %c2_72] : memref<4x18x18xf32, #tpu.memory_space<vmem>>, vector<1x16x16xf32>
    %123 = vector.shape_cast %122 : vector<1x16x16xf32> to vector<16x16xf32>
    %c20 = arith.constant 20 : index
    %124 = memref.load %arg2[%c20] : memref<36xf32, #tpu.memory_space<smem>>
    %125 = vector.broadcast %124 : f32 to vector<16x16xf32>
    %126 = arith.mulf %123, %125 : vector<16x16xf32>
    %127 = arith.addf %121, %126 : vector<16x16xf32>
    %c2_73 = arith.constant 2 : index
    %c1_74 = arith.constant 1 : index
    %c0_75 = arith.constant 0 : index
    %128 = vector.load %arg5[%c2_73, %c1_74, %c0_75] : memref<4x18x18xf32, #tpu.memory_space<vmem>>, vector<1x16x16xf32>
    %129 = vector.shape_cast %128 : vector<1x16x16xf32> to vector<16x16xf32>
    %c21 = arith.constant 21 : index
    %130 = memref.load %arg2[%c21] : memref<36xf32, #tpu.memory_space<smem>>
    %131 = vector.broadcast %130 : f32 to vector<16x16xf32>
    %132 = arith.mulf %129, %131 : vector<16x16xf32>
    %133 = arith.addf %127, %132 : vector<16x16xf32>
    %c2_76 = arith.constant 2 : index
    %c1_77 = arith.constant 1 : index
    %c1_78 = arith.constant 1 : index
    %134 = vector.load %arg5[%c2_76, %c1_77, %c1_78] : memref<4x18x18xf32, #tpu.memory_space<vmem>>, vector<1x16x16xf32>
    %135 = vector.shape_cast %134 : vector<1x16x16xf32> to vector<16x16xf32>
    %c22 = arith.constant 22 : index
    %136 = memref.load %arg2[%c22] : memref<36xf32, #tpu.memory_space<smem>>
    %137 = vector.broadcast %136 : f32 to vector<16x16xf32>
    %138 = arith.mulf %135, %137 : vector<16x16xf32>
    %139 = arith.addf %133, %138 : vector<16x16xf32>
    %c2_79 = arith.constant 2 : index
    %c1_80 = arith.constant 1 : index
    %c2_81 = arith.constant 2 : index
    %140 = vector.load %arg5[%c2_79, %c1_80, %c2_81] : memref<4x18x18xf32, #tpu.memory_space<vmem>>, vector<1x16x16xf32>
    %141 = vector.shape_cast %140 : vector<1x16x16xf32> to vector<16x16xf32>
    %c23 = arith.constant 23 : index
    %142 = memref.load %arg2[%c23] : memref<36xf32, #tpu.memory_space<smem>>
    %143 = vector.broadcast %142 : f32 to vector<16x16xf32>
    %144 = arith.mulf %141, %143 : vector<16x16xf32>
    %145 = arith.addf %139, %144 : vector<16x16xf32>
    %c2_82 = arith.constant 2 : index
    %c2_83 = arith.constant 2 : index
    %c0_84 = arith.constant 0 : index
    %146 = vector.load %arg5[%c2_82, %c2_83, %c0_84] : memref<4x18x18xf32, #tpu.memory_space<vmem>>, vector<1x16x16xf32>
    %147 = vector.shape_cast %146 : vector<1x16x16xf32> to vector<16x16xf32>
    %c24 = arith.constant 24 : index
    %148 = memref.load %arg2[%c24] : memref<36xf32, #tpu.memory_space<smem>>
    %149 = vector.broadcast %148 : f32 to vector<16x16xf32>
    %150 = arith.mulf %147, %149 : vector<16x16xf32>
    %151 = arith.addf %145, %150 : vector<16x16xf32>
    %c2_85 = arith.constant 2 : index
    %c2_86 = arith.constant 2 : index
    %c1_87 = arith.constant 1 : index
    %152 = vector.load %arg5[%c2_85, %c2_86, %c1_87] : memref<4x18x18xf32, #tpu.memory_space<vmem>>, vector<1x16x16xf32>
    %153 = vector.shape_cast %152 : vector<1x16x16xf32> to vector<16x16xf32>
    %c25 = arith.constant 25 : index
    %154 = memref.load %arg2[%c25] : memref<36xf32, #tpu.memory_space<smem>>
    %155 = vector.broadcast %154 : f32 to vector<16x16xf32>
    %156 = arith.mulf %153, %155 : vector<16x16xf32>
    %157 = arith.addf %151, %156 : vector<16x16xf32>
    %c2_88 = arith.constant 2 : index
    %c2_89 = arith.constant 2 : index
    %c2_90 = arith.constant 2 : index
    %158 = vector.load %arg5[%c2_88, %c2_89, %c2_90] : memref<4x18x18xf32, #tpu.memory_space<vmem>>, vector<1x16x16xf32>
    %159 = vector.shape_cast %158 : vector<1x16x16xf32> to vector<16x16xf32>
    %c26 = arith.constant 26 : index
    %160 = memref.load %arg2[%c26] : memref<36xf32, #tpu.memory_space<smem>>
    %161 = vector.broadcast %160 : f32 to vector<16x16xf32>
    %162 = arith.mulf %159, %161 : vector<16x16xf32>
    %163 = arith.addf %157, %162 : vector<16x16xf32>
    %c3_91 = arith.constant 3 : index
    %c0_92 = arith.constant 0 : index
    %c0_93 = arith.constant 0 : index
    %164 = vector.load %arg5[%c3_91, %c0_92, %c0_93] : memref<4x18x18xf32, #tpu.memory_space<vmem>>, vector<1x16x16xf32>
    %165 = vector.shape_cast %164 : vector<1x16x16xf32> to vector<16x16xf32>
    %c27 = arith.constant 27 : index
    %166 = memref.load %arg2[%c27] : memref<36xf32, #tpu.memory_space<smem>>
    %167 = vector.broadcast %166 : f32 to vector<16x16xf32>
    %168 = arith.mulf %165, %167 : vector<16x16xf32>
    %c3_94 = arith.constant 3 : index
    %c0_95 = arith.constant 0 : index
    %c1_96 = arith.constant 1 : index
    %169 = vector.load %arg5[%c3_94, %c0_95, %c1_96] : memref<4x18x18xf32, #tpu.memory_space<vmem>>, vector<1x16x16xf32>
    %170 = vector.shape_cast %169 : vector<1x16x16xf32> to vector<16x16xf32>
    %c28 = arith.constant 28 : index
    %171 = memref.load %arg2[%c28] : memref<36xf32, #tpu.memory_space<smem>>
    %172 = vector.broadcast %171 : f32 to vector<16x16xf32>
    %173 = arith.mulf %170, %172 : vector<16x16xf32>
    %174 = arith.addf %168, %173 : vector<16x16xf32>
    %c3_97 = arith.constant 3 : index
    %c0_98 = arith.constant 0 : index
    %c2_99 = arith.constant 2 : index
    %175 = vector.load %arg5[%c3_97, %c0_98, %c2_99] : memref<4x18x18xf32, #tpu.memory_space<vmem>>, vector<1x16x16xf32>
    %176 = vector.shape_cast %175 : vector<1x16x16xf32> to vector<16x16xf32>
    %c29 = arith.constant 29 : index
    %177 = memref.load %arg2[%c29] : memref<36xf32, #tpu.memory_space<smem>>
    %178 = vector.broadcast %177 : f32 to vector<16x16xf32>
    %179 = arith.mulf %176, %178 : vector<16x16xf32>
    %180 = arith.addf %174, %179 : vector<16x16xf32>
    %c3_100 = arith.constant 3 : index
    %c1_101 = arith.constant 1 : index
    %c0_102 = arith.constant 0 : index
    %181 = vector.load %arg5[%c3_100, %c1_101, %c0_102] : memref<4x18x18xf32, #tpu.memory_space<vmem>>, vector<1x16x16xf32>
    %182 = vector.shape_cast %181 : vector<1x16x16xf32> to vector<16x16xf32>
    %c30 = arith.constant 30 : index
    %183 = memref.load %arg2[%c30] : memref<36xf32, #tpu.memory_space<smem>>
    %184 = vector.broadcast %183 : f32 to vector<16x16xf32>
    %185 = arith.mulf %182, %184 : vector<16x16xf32>
    %186 = arith.addf %180, %185 : vector<16x16xf32>
    %c3_103 = arith.constant 3 : index
    %c1_104 = arith.constant 1 : index
    %c1_105 = arith.constant 1 : index
    %187 = vector.load %arg5[%c3_103, %c1_104, %c1_105] : memref<4x18x18xf32, #tpu.memory_space<vmem>>, vector<1x16x16xf32>
    %188 = vector.shape_cast %187 : vector<1x16x16xf32> to vector<16x16xf32>
    %c31 = arith.constant 31 : index
    %189 = memref.load %arg2[%c31] : memref<36xf32, #tpu.memory_space<smem>>
    %190 = vector.broadcast %189 : f32 to vector<16x16xf32>
    %191 = arith.mulf %188, %190 : vector<16x16xf32>
    %192 = arith.addf %186, %191 : vector<16x16xf32>
    %c3_106 = arith.constant 3 : index
    %c1_107 = arith.constant 1 : index
    %c2_108 = arith.constant 2 : index
    %193 = vector.load %arg5[%c3_106, %c1_107, %c2_108] : memref<4x18x18xf32, #tpu.memory_space<vmem>>, vector<1x16x16xf32>
    %194 = vector.shape_cast %193 : vector<1x16x16xf32> to vector<16x16xf32>
    %c32 = arith.constant 32 : index
    %195 = memref.load %arg2[%c32] : memref<36xf32, #tpu.memory_space<smem>>
    %196 = vector.broadcast %195 : f32 to vector<16x16xf32>
    %197 = arith.mulf %194, %196 : vector<16x16xf32>
    %198 = arith.addf %192, %197 : vector<16x16xf32>
    %c3_109 = arith.constant 3 : index
    %c2_110 = arith.constant 2 : index
    %c0_111 = arith.constant 0 : index
    %199 = vector.load %arg5[%c3_109, %c2_110, %c0_111] : memref<4x18x18xf32, #tpu.memory_space<vmem>>, vector<1x16x16xf32>
    %200 = vector.shape_cast %199 : vector<1x16x16xf32> to vector<16x16xf32>
    %c33 = arith.constant 33 : index
    %201 = memref.load %arg2[%c33] : memref<36xf32, #tpu.memory_space<smem>>
    %202 = vector.broadcast %201 : f32 to vector<16x16xf32>
    %203 = arith.mulf %200, %202 : vector<16x16xf32>
    %204 = arith.addf %198, %203 : vector<16x16xf32>
    %c3_112 = arith.constant 3 : index
    %c2_113 = arith.constant 2 : index
    %c1_114 = arith.constant 1 : index
    %205 = vector.load %arg5[%c3_112, %c2_113, %c1_114] : memref<4x18x18xf32, #tpu.memory_space<vmem>>, vector<1x16x16xf32>
    %206 = vector.shape_cast %205 : vector<1x16x16xf32> to vector<16x16xf32>
    %c34 = arith.constant 34 : index
    %207 = memref.load %arg2[%c34] : memref<36xf32, #tpu.memory_space<smem>>
    %208 = vector.broadcast %207 : f32 to vector<16x16xf32>
    %209 = arith.mulf %206, %208 : vector<16x16xf32>
    %210 = arith.addf %204, %209 : vector<16x16xf32>
    %c3_115 = arith.constant 3 : index
    %c2_116 = arith.constant 2 : index
    %c2_117 = arith.constant 2 : index
    %211 = vector.load %arg5[%c3_115, %c2_116, %c2_117] : memref<4x18x18xf32, #tpu.memory_space<vmem>>, vector<1x16x16xf32>
    %212 = vector.shape_cast %211 : vector<1x16x16xf32> to vector<16x16xf32>
    %c35 = arith.constant 35 : index
    %213 = memref.load %arg2[%c35] : memref<36xf32, #tpu.memory_space<smem>>
    %214 = vector.broadcast %213 : f32 to vector<16x16xf32>
    %215 = arith.mulf %212, %214 : vector<16x16xf32>
    %216 = arith.addf %210, %215 : vector<16x16xf32>
    %c0_118 = arith.constant 0 : index
    %217 = memref.load %arg3[%c0_118] : memref<32xf32, #tpu.memory_space<smem>>
    %218 = vector.broadcast %217 : f32 to vector<16x16xf32>
    %219 = arith.mulf %57, %218 : vector<16x16xf32>
    %c1_119 = arith.constant 1 : index
    %220 = memref.load %arg3[%c1_119] : memref<32xf32, #tpu.memory_space<smem>>
    %221 = vector.broadcast %220 : f32 to vector<16x16xf32>
    %222 = arith.mulf %110, %221 : vector<16x16xf32>
    %223 = arith.addf %219, %222 : vector<16x16xf32>
    %c2_120 = arith.constant 2 : index
    %224 = memref.load %arg3[%c2_120] : memref<32xf32, #tpu.memory_space<smem>>
    %225 = vector.broadcast %224 : f32 to vector<16x16xf32>
    %226 = arith.mulf %163, %225 : vector<16x16xf32>
    %227 = arith.addf %223, %226 : vector<16x16xf32>
    %c3_121 = arith.constant 3 : index
    %228 = memref.load %arg3[%c3_121] : memref<32xf32, #tpu.memory_space<smem>>
    %229 = vector.broadcast %228 : f32 to vector<16x16xf32>
    %230 = arith.mulf %216, %229 : vector<16x16xf32>
    %231 = arith.addf %227, %230 : vector<16x16xf32>
    %c0_122 = arith.constant 0 : index
    %c0_123 = arith.constant 0 : index
    %c0_124 = arith.constant 0 : index
    %c0_125 = arith.constant 0 : index
    %232 = vector.load %arg4[%c0_122, %c0_123, %c0_124, %c0_125] : memref<1x8x16x16xf32, #tpu.memory_space<vmem>>, vector<1x1x16x16xf32>
    %233 = vector.shape_cast %232 : vector<1x1x16x16xf32> to vector<16x16xf32>
    %234 = vector.shape_cast %231 : vector<16x16xf32> to vector<1x1x16x16xf32>
    tpu.vector_store %arg4[%c0_122, %c0_123, %c0_124, %c0_125], %234 {strides = array<i32>} : memref<1x8x16x16xf32, #tpu.memory_space<vmem>>, vector<1x1x16x16xf32>,
    %c4_126 = arith.constant 4 : index
    %235 = memref.load %arg3[%c4_126] : memref<32xf32, #tpu.memory_space<smem>>
    %236 = vector.broadcast %235 : f32 to vector<16x16xf32>
    %237 = arith.mulf %57, %236 : vector<16x16xf32>
    %c5_127 = arith.constant 5 : index
    %238 = memref.load %arg3[%c5_127] : memref<32xf32, #tpu.memory_space<smem>>
    %239 = vector.broadcast %238 : f32 to vector<16x16xf32>
    %240 = arith.mulf %110, %239 : vector<16x16xf32>
    %241 = arith.addf %237, %240 : vector<16x16xf32>
    %c6_128 = arith.constant 6 : index
    %242 = memref.load %arg3[%c6_128] : memref<32xf32, #tpu.memory_space<smem>>
    %243 = vector.broadcast %242 : f32 to vector<16x16xf32>
    %244 = arith.mulf %163, %243 : vector<16x16xf32>
    %245 = arith.addf %241, %244 : vector<16x16xf32>
    %c7_129 = arith.constant 7 : index
    %246 = memref.load %arg3[%c7_129] : memref<32xf32, #tpu.memory_space<smem>>
    %247 = vector.broadcast %246 : f32 to vector<16x16xf32>
    %248 = arith.mulf %216, %247 : vector<16x16xf32>
    %249 = arith.addf %245, %248 : vector<16x16xf32>
    %c0_130 = arith.constant 0 : index
    %c1_131 = arith.constant 1 : index
    %c0_132 = arith.constant 0 : index
    %c0_133 = arith.constant 0 : index
    %250 = vector.load %arg4[%c0_130, %c1_131, %c0_132, %c0_133] : memref<1x8x16x16xf32, #tpu.memory_space<vmem>>, vector<1x1x16x16xf32>
    %251 = vector.shape_cast %250 : vector<1x1x16x16xf32> to vector<16x16xf32>
    %252 = vector.shape_cast %249 : vector<16x16xf32> to vector<1x1x16x16xf32>
    tpu.vector_store %arg4[%c0_130, %c1_131, %c0_132, %c0_133], %252 {strides = array<i32>} : memref<1x8x16x16xf32, #tpu.memory_space<vmem>>, vector<1x1x16x16xf32>,
    %c8_134 = arith.constant 8 : index
    %253 = memref.load %arg3[%c8_134] : memref<32xf32, #tpu.memory_space<smem>>
    %254 = vector.broadcast %253 : f32 to vector<16x16xf32>
    %255 = arith.mulf %57, %254 : vector<16x16xf32>
    %c9_135 = arith.constant 9 : index
    %256 = memref.load %arg3[%c9_135] : memref<32xf32, #tpu.memory_space<smem>>
    %257 = vector.broadcast %256 : f32 to vector<16x16xf32>
    %258 = arith.mulf %110, %257 : vector<16x16xf32>
    %259 = arith.addf %255, %258 : vector<16x16xf32>
    %c10_136 = arith.constant 10 : index
    %260 = memref.load %arg3[%c10_136] : memref<32xf32, #tpu.memory_space<smem>>
    %261 = vector.broadcast %260 : f32 to vector<16x16xf32>
    %262 = arith.mulf %163, %261 : vector<16x16xf32>
    %263 = arith.addf %259, %262 : vector<16x16xf32>
    %c11_137 = arith.constant 11 : index
    %264 = memref.load %arg3[%c11_137] : memref<32xf32, #tpu.memory_space<smem>>
    %265 = vector.broadcast %264 : f32 to vector<16x16xf32>
    %266 = arith.mulf %216, %265 : vector<16x16xf32>
    %267 = arith.addf %263, %266 : vector<16x16xf32>
    %c0_138 = arith.constant 0 : index
    %c2_139 = arith.constant 2 : index
    %c0_140 = arith.constant 0 : index
    %c0_141 = arith.constant 0 : index
    %268 = vector.load %arg4[%c0_138, %c2_139, %c0_140, %c0_141] : memref<1x8x16x16xf32, #tpu.memory_space<vmem>>, vector<1x1x16x16xf32>
    %269 = vector.shape_cast %268 : vector<1x1x16x16xf32> to vector<16x16xf32>
    %270 = vector.shape_cast %267 : vector<16x16xf32> to vector<1x1x16x16xf32>
    tpu.vector_store %arg4[%c0_138, %c2_139, %c0_140, %c0_141], %270 {strides = array<i32>} : memref<1x8x16x16xf32, #tpu.memory_space<vmem>>, vector<1x1x16x16xf32>,
    %c12_142 = arith.constant 12 : index
    %271 = memref.load %arg3[%c12_142] : memref<32xf32, #tpu.memory_space<smem>>
    %272 = vector.broadcast %271 : f32 to vector<16x16xf32>
    %273 = arith.mulf %57, %272 : vector<16x16xf32>
    %c13_143 = arith.constant 13 : index
    %274 = memref.load %arg3[%c13_143] : memref<32xf32, #tpu.memory_space<smem>>
    %275 = vector.broadcast %274 : f32 to vector<16x16xf32>
    %276 = arith.mulf %110, %275 : vector<16x16xf32>
    %277 = arith.addf %273, %276 : vector<16x16xf32>
    %c14_144 = arith.constant 14 : index
    %278 = memref.load %arg3[%c14_144] : memref<32xf32, #tpu.memory_space<smem>>
    %279 = vector.broadcast %278 : f32 to vector<16x16xf32>
    %280 = arith.mulf %163, %279 : vector<16x16xf32>
    %281 = arith.addf %277, %280 : vector<16x16xf32>
    %c15_145 = arith.constant 15 : index
    %282 = memref.load %arg3[%c15_145] : memref<32xf32, #tpu.memory_space<smem>>
    %283 = vector.broadcast %282 : f32 to vector<16x16xf32>
    %284 = arith.mulf %216, %283 : vector<16x16xf32>
    %285 = arith.addf %281, %284 : vector<16x16xf32>
    %c0_146 = arith.constant 0 : index
    %c3_147 = arith.constant 3 : index
    %c0_148 = arith.constant 0 : index
    %c0_149 = arith.constant 0 : index
    %286 = vector.load %arg4[%c0_146, %c3_147, %c0_148, %c0_149] : memref<1x8x16x16xf32, #tpu.memory_space<vmem>>, vector<1x1x16x16xf32>
    %287 = vector.shape_cast %286 : vector<1x1x16x16xf32> to vector<16x16xf32>
    %288 = vector.shape_cast %285 : vector<16x16xf32> to vector<1x1x16x16xf32>
    tpu.vector_store %arg4[%c0_146, %c3_147, %c0_148, %c0_149], %288 {strides = array<i32>} : memref<1x8x16x16xf32, #tpu.memory_space<vmem>>, vector<1x1x16x16xf32>,
    %c16_150 = arith.constant 16 : index
    %289 = memref.load %arg3[%c16_150] : memref<32xf32, #tpu.memory_space<smem>>
    %290 = vector.broadcast %289 : f32 to vector<16x16xf32>
    %291 = arith.mulf %57, %290 : vector<16x16xf32>
    %c17_151 = arith.constant 17 : index
    %292 = memref.load %arg3[%c17_151] : memref<32xf32, #tpu.memory_space<smem>>
    %293 = vector.broadcast %292 : f32 to vector<16x16xf32>
    %294 = arith.mulf %110, %293 : vector<16x16xf32>
    %295 = arith.addf %291, %294 : vector<16x16xf32>
    %c18_152 = arith.constant 18 : index
    %296 = memref.load %arg3[%c18_152] : memref<32xf32, #tpu.memory_space<smem>>
    %297 = vector.broadcast %296 : f32 to vector<16x16xf32>
    %298 = arith.mulf %163, %297 : vector<16x16xf32>
    %299 = arith.addf %295, %298 : vector<16x16xf32>
    %c19_153 = arith.constant 19 : index
    %300 = memref.load %arg3[%c19_153] : memref<32xf32, #tpu.memory_space<smem>>
    %301 = vector.broadcast %300 : f32 to vector<16x16xf32>
    %302 = arith.mulf %216, %301 : vector<16x16xf32>
    %303 = arith.addf %299, %302 : vector<16x16xf32>
    %c0_154 = arith.constant 0 : index
    %c4_155 = arith.constant 4 : index
    %c0_156 = arith.constant 0 : index
    %c0_157 = arith.constant 0 : index
    %304 = vector.load %arg4[%c0_154, %c4_155, %c0_156, %c0_157] : memref<1x8x16x16xf32, #tpu.memory_space<vmem>>, vector<1x1x16x16xf32>
    %305 = vector.shape_cast %304 : vector<1x1x16x16xf32> to vector<16x16xf32>
    %306 = vector.shape_cast %303 : vector<16x16xf32> to vector<1x1x16x16xf32>
    tpu.vector_store %arg4[%c0_154, %c4_155, %c0_156, %c0_157], %306 {strides = array<i32>} : memref<1x8x16x16xf32, #tpu.memory_space<vmem>>, vector<1x1x16x16xf32>,
    %c20_158 = arith.constant 20 : index
    %307 = memref.load %arg3[%c20_158] : memref<32xf32, #tpu.memory_space<smem>>
    %308 = vector.broadcast %307 : f32 to vector<16x16xf32>
    %309 = arith.mulf %57, %308 : vector<16x16xf32>
    %c21_159 = arith.constant 21 : index
    %310 = memref.load %arg3[%c21_159] : memref<32xf32, #tpu.memory_space<smem>>
    %311 = vector.broadcast %310 : f32 to vector<16x16xf32>
    %312 = arith.mulf %110, %311 : vector<16x16xf32>
    %313 = arith.addf %309, %312 : vector<16x16xf32>
    %c22_160 = arith.constant 22 : index
    %314 = memref.load %arg3[%c22_160] : memref<32xf32, #tpu.memory_space<smem>>
    %315 = vector.broadcast %314 : f32 to vector<16x16xf32>
    %316 = arith.mulf %163, %315 : vector<16x16xf32>
    %317 = arith.addf %313, %316 : vector<16x16xf32>
    %c23_161 = arith.constant 23 : index
    %318 = memref.load %arg3[%c23_161] : memref<32xf32, #tpu.memory_space<smem>>
    %319 = vector.broadcast %318 : f32 to vector<16x16xf32>
    %320 = arith.mulf %216, %319 : vector<16x16xf32>
    %321 = arith.addf %317, %320 : vector<16x16xf32>
    %c0_162 = arith.constant 0 : index
    %c5_163 = arith.constant 5 : index
    %c0_164 = arith.constant 0 : index
    %c0_165 = arith.constant 0 : index
    %322 = vector.load %arg4[%c0_162, %c5_163, %c0_164, %c0_165] : memref<1x8x16x16xf32, #tpu.memory_space<vmem>>, vector<1x1x16x16xf32>
    %323 = vector.shape_cast %322 : vector<1x1x16x16xf32> to vector<16x16xf32>
    %324 = vector.shape_cast %321 : vector<16x16xf32> to vector<1x1x16x16xf32>
    tpu.vector_store %arg4[%c0_162, %c5_163, %c0_164, %c0_165], %324 {strides = array<i32>} : memref<1x8x16x16xf32, #tpu.memory_space<vmem>>, vector<1x1x16x16xf32>,
    %c24_166 = arith.constant 24 : index
    %325 = memref.load %arg3[%c24_166] : memref<32xf32, #tpu.memory_space<smem>>
    %326 = vector.broadcast %325 : f32 to vector<16x16xf32>
    %327 = arith.mulf %57, %326 : vector<16x16xf32>
    %c25_167 = arith.constant 25 : index
    %328 = memref.load %arg3[%c25_167] : memref<32xf32, #tpu.memory_space<smem>>
    %329 = vector.broadcast %328 : f32 to vector<16x16xf32>
    %330 = arith.mulf %110, %329 : vector<16x16xf32>
    %331 = arith.addf %327, %330 : vector<16x16xf32>
    %c26_168 = arith.constant 26 : index
    %332 = memref.load %arg3[%c26_168] : memref<32xf32, #tpu.memory_space<smem>>
    %333 = vector.broadcast %332 : f32 to vector<16x16xf32>
    %334 = arith.mulf %163, %333 : vector<16x16xf32>
    %335 = arith.addf %331, %334 : vector<16x16xf32>
    %c27_169 = arith.constant 27 : index
    %336 = memref.load %arg3[%c27_169] : memref<32xf32, #tpu.memory_space<smem>>
    %337 = vector.broadcast %336 : f32 to vector<16x16xf32>
    %338 = arith.mulf %216, %337 : vector<16x16xf32>
    %339 = arith.addf %335, %338 : vector<16x16xf32>
    %c0_170 = arith.constant 0 : index
    %c6_171 = arith.constant 6 : index
    %c0_172 = arith.constant 0 : index
    %c0_173 = arith.constant 0 : index
    %340 = vector.load %arg4[%c0_170, %c6_171, %c0_172, %c0_173] : memref<1x8x16x16xf32, #tpu.memory_space<vmem>>, vector<1x1x16x16xf32>
    %341 = vector.shape_cast %340 : vector<1x1x16x16xf32> to vector<16x16xf32>
    %342 = vector.shape_cast %339 : vector<16x16xf32> to vector<1x1x16x16xf32>
    tpu.vector_store %arg4[%c0_170, %c6_171, %c0_172, %c0_173], %342 {strides = array<i32>} : memref<1x8x16x16xf32, #tpu.memory_space<vmem>>, vector<1x1x16x16xf32>,
    %c28_174 = arith.constant 28 : index
    %343 = memref.load %arg3[%c28_174] : memref<32xf32, #tpu.memory_space<smem>>
    %344 = vector.broadcast %343 : f32 to vector<16x16xf32>
    %345 = arith.mulf %57, %344 : vector<16x16xf32>
    %c29_175 = arith.constant 29 : index
    %346 = memref.load %arg3[%c29_175] : memref<32xf32, #tpu.memory_space<smem>>
    %347 = vector.broadcast %346 : f32 to vector<16x16xf32>
    %348 = arith.mulf %110, %347 : vector<16x16xf32>
    %349 = arith.addf %345, %348 : vector<16x16xf32>
    %c30_176 = arith.constant 30 : index
    %350 = memref.load %arg3[%c30_176] : memref<32xf32, #tpu.memory_space<smem>>
    %351 = vector.broadcast %350 : f32 to vector<16x16xf32>
    %352 = arith.mulf %163, %351 : vector<16x16xf32>
    %353 = arith.addf %349, %352 : vector<16x16xf32>
    %c31_177 = arith.constant 31 : index
    %354 = memref.load %arg3[%c31_177] : memref<32xf32, #tpu.memory_space<smem>>
    %355 = vector.broadcast %354 : f32 to vector<16x16xf32>
    %356 = arith.mulf %216, %355 : vector<16x16xf32>
    %357 = arith.addf %353, %356 : vector<16x16xf32>
    %c0_178 = arith.constant 0 : index
    %c7_179 = arith.constant 7 : index
    %c0_180 = arith.constant 0 : index
    %c0_181 = arith.constant 0 : index
    %358 = vector.load %arg4[%c0_178, %c7_179, %c0_180, %c0_181] : memref<1x8x16x16xf32, #tpu.memory_space<vmem>>, vector<1x1x16x16xf32>
    %359 = vector.shape_cast %358 : vector<1x1x16x16xf32> to vector<16x16xf32>
    %360 = vector.shape_cast %357 : vector<16x16xf32> to vector<1x1x16x16xf32>
    tpu.vector_store %arg4[%c0_178, %c7_179, %c0_180, %c0_181], %360 {strides = array<i32>} : memref<1x8x16x16xf32, #tpu.memory_space<vmem>>, vector<1x1x16x16xf32>,
    return
  }
  func.func @transform_0(%arg0: i32) -> (i32, i32, i32, i32) {
    %c0_i32 = arith.constant 0 : i32
    %c0_i32_0 = arith.constant 0 : i32
    %c0_i32_1 = arith.constant 0 : i32
    %c0_i32_2 = arith.constant 0 : i32
    return %arg0, %c0_i32, %c0_i32_0, %c0_i32_1 : i32, i32, i32, i32
  }
  func.func @transform_1(%arg0: i32) -> i32 {
    %c0_i32 = arith.constant 0 : i32
    %c0_i32_0 = arith.constant 0 : i32
    return %c0_i32 : i32
  }
  func.func @transform_2(%arg0: i32) -> i32 {
    %c0_i32 = arith.constant 0 : i32
    %c0_i32_0 = arith.constant 0 : i32
    return %c0_i32 : i32
  }
  func.func @transform_3(%arg0: i32) -> (i32, i32, i32, i32) {
    %c0_i32 = arith.constant 0 : i32
    %c0_i32_0 = arith.constant 0 : i32
    %c0_i32_1 = arith.constant 0 : i32
    %c0_i32_2 = arith.constant 0 : i32
    return %arg0, %c0_i32, %c0_i32_0, %c0_i32_1 : i32, i32, i32, i32
  }
}

</mosaic_0001>

<bundles_post_ra>
// kernel: tpu_custom_call.1
= control target key start
LH: loop header
LB: loop body
LE: loop exit
PB: predicated region body
PF: predicated region fallthrough
CT: control target
= control target key end

     0   :  { %s2027_s0 = inlined_call_operand.hbm [shape: f32[2,4,16,16], index: 0, kind: input, shape index: {}]   ;;  %s2028_s1 = inlined_call_operand.vmem [shape: f32[36], index: 1, kind: input, shape index: {}]   ;;  %s2029_s2 = inlined_call_operand.vmem [shape: f32[32], index: 2, kind: input, shape index: {}]   ;;  %s2030_s3 = inlined_call_operand.hbm [shape: f32[2,8,16,16], index: 3, kind: output, shape index: {}]  }
   0x1   :  { %2042 = sst [smem:[#allocation21_spill]] %s2027_s0 }
   0x2   :  { %2043 = sst [smem:[#allocation22_spill]] %s2028_s1 }
   0x3   :  { %2044 = sst [smem:[#allocation23_spill]] %s2029_s2 }
   0x4   :  { %8 = vsyncpa [#allocation4], 0 }
   0x5   :  { %10 = vsyncpa [#allocation4 + $0x1], 0 }
   0x6   :  { %11 = vsyncpa [#allocation6], 0 }
   0x7   :  { %12 = vsyncpa [#allocation9], 0 }
   0x8   :  { %13 = vsyncpa [#allocation5], 0 }
   0x9   :  { %15 = vsyncpa [#allocation5 + $0x1], 0  ;;  %s1354_s12 = smov 0   ;;  %s1356_s13 = smov 0  }
   0xa   :  { %s1358_s14 = smov 0   ;;  %s1360_s15 = smov 0  }
   0xb LB: > { %2045 = sst [smem:[#allocation15_spill]] %s1312_s13  ;;  %s1375_s16 = sadd.s32 4294967295, %s1320_s15   ;;  %s1320_s15 = sphi %s1360_s15, %s2073_s15   ;;  %s1316_s14 = sphi %s1358_s14, %s2076_s14   ;;  %s1312_s13 = sphi %s1356_s13, %s2075_s13   ;;  %s1308_s12 = sphi %s1354_s12, %s2074_s12  }
   0xc   : > { %2046 = sst [smem:[#allocation16_spill]] %s1316_s14  ;;  %s1015_s17 = sadd.s32 4294967294, %s1320_s15  }
   0xd   : > { %2047 = sst [smem:[#allocation17_spill]] %s1320_s15  ;;  %s1379_s18 = sadd.s32 1, %s1320_s15  }
   0xe   : > { %2048 = sst [smem:[#allocation18_spill]] %s1379_s18  ;;  %s28_s19 = sadd.s32 1, %s1316_s14 }
   0xf   : > { %s25_s20 = ssub.s32 %s1320_s15, %s1379_s18  ;;  %p35_p0 = scmp.ne.s32.totalorder %s1316_s14, %s1312_s13 }
  0x10   : > { %p26_p1 = scmp.eq.s32.totalorder %s25_s20, 0  ;;  %p36_p2 = scmp.eq.s32.totalorder %s1320_s15, 0 }
  0x11   : > { %p41_p3 = scmp.ne.s32.totalorder %s1312_s13, %s1308_s12  ;;  %p2031_p4 = scmp.eq.s32.totalorder %s1375_s16, 0 }
  0x12   : > { %s1391_s21 = scalar_select %p26_p1, %s1316_s14, %s28_s19  }
  0x13   : > { %p1393_p5 = por %p36_p2, %p35_p0  ;;  %p1399_p6 = por %p2031_p4, %p41_p3 }
  0x14   : > { %2049 = sst [smem:[#allocation19_spill]] %s1391_s21  ;;  %p107_p7 = scmp.eq.s32.totalorder %s1375_s16, 1 }
  0x15   : > { %s2051_s23 = scalar_select %p1399_p6, 1, 0 }
  0x16   : > { %p113_p8 = scmp.eq.s32.totalorder %s1015_s17, 1  ;;  %p1016_p9 = scmp.ge.s32.totalorder %s1320_s15, 1 }
  0x17   : > { %p120_p10 = scmp.lt.s32.totalorder %s1320_s15, 3  ;;  %p1406_p11 = por %p107_p7, %p35_p0 }
  0x18   : > { %p1410_p12 = por %p113_p8, %p41_p3  ;;  %s2056_s1 = sld [smem:[#allocation22_spill]] }
  0x19   : > { %s2052_s24 = scalar_select %p1406_p11, 1, 0 }
  0x1a   : > { %s2053_s25 = scalar_select %p1410_p12, 1, 0 }
  0x1b   : > { %p1414_p13 = pnand %p1016_p9, %p120_p10  ;;  %p1144_p2 = scmp.lt.s32.totalorder %s1320_s15, 2 }
  0x1c   : > { %2054 = sst [smem:[#allocation20_spill]] %s2053_s25 }
  0x1d   : > { %s2055_s26 = scalar_select %p1414_p13, 1, 0 }
  0x1e   : > { %s133_s29 = sshll.u32 %s2056_s1, 4  ;;  %p1127_p1 = pneg %p1414_p13  ;;  %s134_s29 = int_to_ptr.vmem [resolvable:$true] %s133_s29 }
  0x1f   : > { %s2058_s2 = sld [smem:[#allocation23_spill]]  ;;  %p1436_p3 = pnand %p1144_p2, %p1393_p5 }
  0x20   : > { %p1427_p7 = pnand %p1127_p1, %p2031_p4  ;;  %s1190_s8 = scalar_lea.vmem %s134_s29, 16 }
  0x21   : > { %s2059_s7 = scalar_select %p1436_p3, 1, 0 }
  0x22   : > { %p1191_p8 = scmp.ne.s32.totalorder %s134_s29, %s1190_s8  ;;  %p1192_p9 = pneg %p1427_p7 }
  0x23   : > { %p1198_p0 = scmp.lt.s32.totalorder %s134_s29, %s134_s29  ;;  %p1199_p4 = scmp.lt.s32.totalorder %s1190_s8, %s1190_s8 }
  0x24   : > { %p1193_p10 = pnand %p1192_p9, %p1191_p8 }
  0x25   : > { %s144_s6 = sshll.u32 %s2058_s2, 4  ;;  %p1200_p12 = por %p1199_p4, %p1198_p0  ;;  %s145_s6 = int_to_ptr.vmem [resolvable:$true] %s144_s6 }
  0x26   : > { %p1194_p1 = pneg %p1193_p10 }
  0x28   : > { %p1201_p11 = pnand %p1200_p12, %p1194_p1 }
  0x2a   : > { %1204 = shalt.err (!%p1201_p11)
}
  0x2b   : > { %s1322_s9 = smov [#allocation7]   ;;  %s155_s10 = sand.u32 1, %s1316_s14  }
  0x2c   : > { %1130 = dma.vmem_to_smem (!%p1427_p7), %s134_s29, 16, %s1322_s9, [#allocation6]  }
  0x2d   : > { %s1205_s11 = scalar_lea.vmem %s145_s6, 16  ;;  %p1213_p8 = scmp.lt.s32.totalorder %s145_s6, %s145_s6 }
  0x2e   : > { %p1206_p5 = scmp.ne.s32.totalorder %s145_s6, %s1205_s11  ;;  %p1214_p10 = scmp.lt.s32.totalorder %s1205_s11, %s1205_s11 }
  0x30   : > { %p1208_p2 = pnand %p1206_p5, %p1192_p9  ;;  %p1215_p13 = por %p1214_p10, %p1213_p8 }
  0x32   : > { %p1209_p6 = pneg %p1208_p2 }
  0x34   : > { %p1216_p3 = pnand %p1215_p13, %p1209_p6 }
  0x36   : > { %1219 = shalt.err (!%p1216_p3)
}
  0x37   : > { %s1323_s17 = smov [#allocation8]   ;;  %s1020_s19 = sshll.u32 %s155_s10, 6 }
  0x38   : > { %1133 = dma.vmem_to_smem (!%p1427_p7), %s145_s6, 16, %s1323_s17, [#allocation9]  }
  0x39   : > { %s1113_s20 = sshll.u32 %s1320_s15, 10  ;;  %s2060_s0 = sld [smem:[#allocation21_spill]] }
  0x3a   : > { %s159_s29 = scalar_lea.vmem [#allocation3], %s1020_s19  ;;  %s1461_s5 = scalar_lea.sflag [#allocation4], %s155_s10 }
  0x3b   : > { %s166_s4 = sshll.u32 %s159_s29, 4  ;;  %p2061_p6 = scmp.ne.s32.totalorder %s2059_s7, 0  ;;  %s1459_s4 = int_to_ptr.vmem [resolvable:$true] %s166_s4 }
  0x3d   : > { %p1222_p11 = pneg %p2061_p6 }
  0x3f   : > { %s1457_s28 = scalar_lea.hbm %s2060_s0, %s1113_s20  ;;  %s1225_s9 = scalar_lea.hbm %s2060_s0, 2048 }
  0x40   : > { %s1220_s30 = scalar_lea.hbm %s1457_s28, 1024  ;;  %p1226_p0 = scmp.lt.s32.totalorder %s1457_s28, %s2060_s0 }
  0x41   : > { %p1221_p4 = scmp.ne.s32.totalorder %s1457_s28, %s1220_s30  ;;  %p1227_p7 = scmp.lt.s32.totalorder %s1225_s9, %s1220_s30 }
  0x43   : > { %p1223_p12 = pnand %p1222_p11, %p1221_p4  ;;  %p1228_p3 = por %p1227_p7, %p1226_p0 }
  0x45   : > { %p1224_p13 = pneg %p1223_p12 }
  0x47   : > { %p1229_p9 = pnand %p1228_p3, %p1224_p13 }
  0x49   : > { %1232 = shalt.err (!%p1229_p9)
}
  0x4a   : > { %s1233_s10 = scalar_lea.vmem %s1459_s4, 1024  ;;  %s1324_s19 = smov [#allocation3]  }
  0x4b   : > { %p1234_p1 = scmp.ne.s32.totalorder %s1459_s4, %s1233_s10  ;;  %s1238_s20 = sshll.u32 %s1324_s19, 4  ;;  %s1239_s20 = int_to_ptr.vmem [resolvable:$false] %s1238_s20 }
  0x4c   : > { %s1240_s22 = scalar_lea.vmem %s1239_s20, 2048  ;;  %p1241_p8 = scmp.lt.s32.totalorder %s1459_s4, %s1239_s20 }
  0x4d   : > { %p1236_p5 = pnand %p1234_p1, %p1222_p11  ;;  %p1242_p10 = scmp.lt.s32.totalorder %s1240_s22, %s1233_s10 }
  0x4f   : > { %p1237_p2 = pneg %p1236_p5  ;;  %p1243_p4 = por %p1242_p10, %p1241_p8 }
  0x51   : > { %p1244_p12 = pnand %p1243_p4, %p1237_p2 }
  0x53   : > { %1247 = shalt.err (!%p1244_p12)
}
  0x54   : > { %s1325_s27 = smov 128   ;;  %s1326_s29 = smov 8  }
  0x55   : > { %1137 = dma.hbm_to_vmem [thread:$0]  (!%p2061_p6), %s1457_s28, 1024, %s1459_s4, %s1461_s5, %s1325_s27, %s1325_s27, %s1326_s29  }
  0x56   : > { %p2062_p11 = scmp.ne.s32.totalorder %s2055_s26, 0 }
  0x57   : > { %s1485_s30 = sand.u32 (!%p2062_p11), 1, %s1312_s13   ;;  %p2063_p13 = scmp.ne.s32.totalorder (!%p2062_p11), %s2051_s23, 0 }
  0x58   : > { %178 = sbr.rel (%p2062_p11) target bundleno = 472 (0x1d8), region = 32  ;;  %s1024_s6 = sshll.u32 (!%p2062_p11), %s1485_s30, 6 }
  0x59   : > { %s181_s8 = scalar_lea.sflag (!%p2062_p11), [#allocation4], %s1485_s30  ;;  %s1489_s9 = scalar_lea.vmem (!%p2062_p11), [#allocation3], %s1024_s6 }
  0x5d   : > { %1291 = dma.done.wait (%p2063_p13), %s181_s8, 1024  }
  0x5e   : > { %1293 = vsyncadd (%p2063_p13), %s181_s8, 4294966272  ;;  %p2064_p6 = scmp.eq.s32.totalorder %s1375_s16, 0 }
  0x60   : > { %1295 = dma.done.wait (%p2064_p6), [#allocation6], 16   ;;  %p2065_p0 = pmov %p2064_p6 }
  0x62   : > { %1297 = vsyncadd (%p2065_p0), [#allocation6], 4294967280  ;;  %p2066_p7 = pmov %p2065_p0 }
  0x63   : > { %p2067_p3 = pmov %p2065_p0 }
  0x64   : > { %1299 = dma.done.wait (%p2066_p7), [#allocation9], 16  }
  0x65   : > { %1301 = vsyncadd (%p2067_p3), [#allocation9], 4294967280 }
  0x66   : > { %197 = sfence }
  0x67   : > { %v230_v0 = vld [vmem:[%s1489_s9] sm:$0xff]  ;;  %v232_v1 = vld [vmem:[%s1489_s9 + $0x10] sm:$0xff]  ;;  %vm216_vm0 = vcmask 146432   ;;  %s1327_s23 = smov 1   ;;  %vm219_vm1 = vcmask 140288   ;;  %v231_v2 = vld [vmem:[%s1489_s9 + $0x8] sm:$0xff] }
  0x68   : > { %246 = vrot.lane.b32.xlu0 %v230_v0, %s1327_s23  ;;  %250 = vrot.lane.b32.xlu1 %v232_v1, %s1327_s23  ;;  %v233_v3 = vld [vmem:[%s1489_s9 + $0x18] sm:$0xff]  ;;  %v1328_v4 = vmov 0.0   ;;  %v235_v5 = vld [vmem:[%s1489_s9 + $0x28] sm:$0xff]  ;;  %vm270_vm2 = vcmask 138248   ;;  %s1028_s26 = sld [smem:[#allocation7 + $0x1]]  ;;  %s1329_s5 = smov 127  }
  0x69   : > { %217 = vst.msk [vmem:[#allocation2] sm:$0xff] %vm216_vm0, %v1328_v4  ;;  %218 = vst.msk [vmem:[#allocation2 + $0x8] sm:$0xff] %vm216_vm0, %v1328_v4  ;;  %v234_v6 = vld [vmem:[%s1489_s9 + $0x20] sm:$0xff]  ;;  %v237_v7 = vld [vmem:[%s1489_s9 + $0x38] sm:$0xff]  ;;  %s1513_s7 = sld [smem:[#allocation7 + $0x2]]  ;;  %s1330_s17 = smov 126  }
  0x6a   : > { %221 = vst.msk [vmem:[#allocation2 + $0x18] sm:$0xff] %vm216_vm0, %v1328_v4  ;;  %222 = vst.msk [vmem:[#allocation2 + $0x20] sm:$0xff] %vm216_vm0, %v1328_v4  ;;  %v236_v8 = vld [vmem:[%s1489_s9 + $0x30] sm:$0xff]  ;;  %s1517_s28 = sld [smem:[#allocation7 + $0x4]]  ;;  %vm728_vm3 = vcmask 130048   ;;  %p2068_p1 = scmp.ne.s32.totalorder %s2052_s24, 0 }
  0x6b   : > { %224 = vst.msk [vmem:[#allocation2 + $0x30] sm:$0xff] %vm216_vm0, %v1328_v4  ;;  %225 = vst.msk [vmem:[#allocation2 + $0x38] sm:$0xff] %vm216_vm0, %v1328_v4  ;;  %s1525_s4 = sld [smem:[#allocation7 + $0x5]] }
  0x6c   : > { %227 = vst.msk [vmem:[#allocation2 + $0x48] sm:$0xff] %vm216_vm0, %v1328_v4  ;;  %228 = vst.msk [vmem:[#allocation2 + $0x50] sm:$0xff] %vm216_vm0, %v1328_v4  ;;  %248 = vrot.lane.b32.xlu0 %v231_v2, %s1327_s23  ;;  %252 = vrot.lane.b32.xlu1 %v233_v3, %s1327_s23  ;;  %s1037_s11 = sld [smem:[#allocation7 + $0xa]] }
  0x6d   : > { %220 = vst.msk [vmem:[#allocation2 + $0x10] sm:$0x3] %vm219_vm1, %v1328_v4  ;;  %223 = vst.msk [vmem:[#allocation2 + $0x28] sm:$0x3] %vm219_vm1, %v1328_v4  ;;  %s1038_s10 = sld [smem:[#allocation7 + $0xb]] }
  0x6e   : > { %226 = vst.msk [vmem:[#allocation2 + $0x40] sm:$0x3] %vm219_vm1, %v1328_v4  ;;  %229 = vst.msk [vmem:[#allocation2 + $0x58] sm:$0x3] %vm219_vm1, %v1328_v4  ;;  %v286_v13 = vstv %s1028_s26  ;;  %s1046_s19 = sld [smem:[#allocation7 + $0x13]] }
  0x6f   : > { %v300_v18 = vstv %s1513_s7  ;;  %s1047_s20 = sld [smem:[#allocation7 + $0x14]] }
  0x70   : > { %256 = vrot.lane.b32.xlu1 %v235_v5, %s1327_s23  ;;  %254 = vrot.lane.b32.xlu0 %v234_v6, %s1327_s23  ;;  %v322_v25 = vstv %s1517_s28  ;;  %s1055_s22 = sld [smem:[#allocation7 + $0x1c]] }
  0x71   : > { %v336_v29 = vstv %s1525_s4  ;;  %s1040_s27 = sld [smem:[#allocation7 + $0xd]] }
  0x72   : > { %v393_v31 = vstv %s1037_s11  ;;  %s1056_s29 = sld [smem:[#allocation7 + $0x1d]] }
  0x73   : > { %v407_v37 = vstv %s1038_s10  ;;  %s1041_s6 = sld [smem:[#allocation7 + $0xe]] }
  0x74   : > { %260 = vrot.lane.b32.xlu1 %v237_v7, %s1327_s23  ;;  %258 = vrot.lane.b32.xlu0 %v236_v8, %s1327_s23  ;;  %v500_v39 = vstv %s1046_s19  ;;  %s1049_s8 = sld [smem:[#allocation7 + $0x16]] }
  0x75   : > { %v514_v45 = vstv %s1047_s20  ;;  %s1050_s9 = sld [smem:[#allocation7 + $0x17]] }
  0x76   : > { %v607_v47 = vstv %s1055_s22  ;;  %s1058_s23 = sld [smem:[#allocation7 + $0x1f]] }
  0x77   : > { %v429_v54 = vstv %s1040_s27  ;;  %s1034_s26 = sld [smem:[#allocation7 + $0x7]] }
  0x78   : > { %v621_v58 = vstv %s1056_s29  ;;  %s1043_s7 = sld [smem:[#allocation7 + $0x10]] }
  0x79   : > { %v443_v61 = vstv %s1041_s6  ;;  %s1059_s28 = sld [smem:[#allocation7 + $0x20]] }
  0x7a   : > { %v536_v1 = vstv %s1049_s8  ;;  %s1035_s4 = sld [smem:[#allocation7 + $0x8]] }
  0x7b   : > { %v550_v5 = vstv %s1050_s9  ;;  %s1044_s11 = sld [smem:[#allocation7 + $0x11]] }
  0x7c   : > { %s1052_s10 = sld [smem:[#allocation7 + $0x19]] }
  0x7d   : > { %s1053_s19 = sld [smem:[#allocation7 + $0x1a]] }
  0x7e   : > { %s1061_s20 = sld [smem:[#allocation7 + $0x22]] }
  0x7f   : > { %s1062_s22 = sld [smem:[#allocation7 + $0x23]] }
  0x80   : > { %s281_s27 = sld [smem:[#allocation7]] }
  0x81   : > { %s1030_s29 = sld [smem:[#allocation7 + $0x3]] }
  0x82   : > { %s1673_s6 = sld [smem:[#allocation7 + $0x6]] }
  0x83   : > { %s1045_s8 = sld [smem:[#allocation7 + $0x12]] }
  0x84   : > { %s1048_s9 = sld [smem:[#allocation7 + $0x15]] }
  0x85   : > { %s1758_s0 = sld [smem:[#allocation8 + $0x2]] }
  0x86   : > { %s1760_s1 = sld [smem:[#allocation8 + $0x6]] }
  0x87   : > { %s1762_s2 = sld [smem:[#allocation8 + $0xa]] }
  0x88   : > { %s1764_s21 = sld [smem:[#allocation8 + $0xe]] }
  0x89   : > { %s1767_s14 = sld [smem:[#allocation8 + $0x12]] }
  0x8a   : > { %s1769_s13 = sld [smem:[#allocation8 + $0x16]] }
  0x8b   : > { %s1771_s18 = sld [smem:[#allocation8 + $0x1a]] }
  0x8c   : > { %s1842_s15 = sld [smem:[#allocation8 + $0xf]] }
  0x8d   : > { %s1844_s25 = sld [smem:[#allocation8 + $0x13]] }
  0xda   : > { %v247_v9 = vpop.permute.xlu0 %246  ;;  %v251_v10 = vpop.permute.xlu1 %250 }
  0xdb   : > { %271 = vst.msk [vmem:[#allocation2 + $0x1] sm:$0xff] %vm270_vm2, %v247_v9  ;;  %273 = vst.msk [vmem:[#allocation2 + $0x19] sm:$0xff] %vm270_vm2, %v251_v10  ;;  %v643_v9 = vstv %s1058_s23  ;;  %s1054_s23 = sld [smem:[#allocation7 + $0x1b]] }
  0xde   : > { %v249_v11 = vpop.permute.xlu0 %248  ;;  %v253_v12 = vpop.permute.xlu1 %252 }
  0xdf   : > { %272 = vst.msk [vmem:[#allocation2 + $0x9] sm:$0xff] %vm270_vm2, %v249_v11  ;;  %274 = vst.msk [vmem:[#allocation2 + $0x21] sm:$0xff] %vm270_vm2, %v253_v12 }
  0xe2   : > { %v1519_v14 = vld [vmem:[#allocation2] sm:$0xff]  ;;  %v257_v15 = vpop.permute.xlu1 %256  ;;  %v255_v16 = vpop.permute.xlu0 %254  ;;  %v1546_v30 = vld [vmem:[#allocation2 + $0x18] sm:$0xff] }
  0xe3   : > { %v287_v17 = vmul.f32 %v286_v13, %v1519_v14  ;;  %276 = vst.msk [vmem:[#allocation2 + $0x39] sm:$0xff] %vm270_vm2, %v257_v15  ;;  %275 = vst.msk [vmem:[#allocation2 + $0x31] sm:$0xff] %vm270_vm2, %v255_v16  ;;  %v301_v23 = vmul.f32 %v300_v18, %v1519_v14  ;;  %v1534_v24 = vld [vmem:[#allocation2 + $0x1] sm:$0xff]  ;;  %v394_v35 = vmul.f32 %v393_v31, %v1546_v30  ;;  %v1580_v53 = vld [vmem:[#allocation2 + $0x19] sm:$0xff]  ;;  %v358_v15 = vstv %s1034_s26  ;;  %s1057_s26 = sld [smem:[#allocation7 + $0x1e]] }
  0xe4   : > { %v323_v27 = vmul.f32 %v322_v25, %v1534_v24  ;;  %v337_v34 = vmul.f32 %v336_v29, %v1534_v24  ;;  %v408_v41 = vmul.f32 %v407_v37, %v1546_v30  ;;  %v430_v56 = vmul.f32 %v429_v54, %v1580_v53 }
  0xe5   : > { %291 = vrot.lane.b32.xlu0 %v287_v17, %s1329_s5  ;;  %v444_v63 = vmul.f32 %v443_v61, %v1580_v53 }
  0xe6   : > { %v1528_v19 = vld [vmem:[#allocation2 + $0x8] sm:$0xff]  ;;  %v261_v20 = vpop.permute.xlu1 %260  ;;  %v259_v21 = vpop.permute.xlu0 %258  ;;  %v1548_v32 = vld [vmem:[#allocation2 + $0x20] sm:$0xff] }
  0xe7   : > { %v288_v22 = vmul.f32 %v286_v13, %v1528_v19  ;;  %278 = vst.msk [vmem:[#allocation2 + $0x51] sm:$0xff] %vm270_vm2, %v261_v20  ;;  %277 = vst.msk [vmem:[#allocation2 + $0x49] sm:$0xff] %vm270_vm2, %v259_v21  ;;  %v302_v26 = vmul.f32 %v300_v18, %v1528_v19  ;;  %v1541_v28 = vld [vmem:[#allocation2 + $0x9] sm:$0xff]  ;;  %v395_v36 = vmul.f32 %v393_v31, %v1548_v32  ;;  %v1582_v55 = vld [vmem:[#allocation2 + $0x21] sm:$0xff]  ;;  %v465_v21 = vstv %s1043_s7  ;;  %s1694_s7 = sld [smem:[#allocation7 + $0xf]] }
  0xe8   : > { %v324_v33 = vmul.f32 %v322_v25, %v1541_v28  ;;  %v409_v42 = vmul.f32 %v407_v37, %v1548_v32  ;;  %v431_v57 = vmul.f32 %v429_v54, %v1582_v55  ;;  %v338_v62 = vmul.f32 %v336_v29, %v1541_v28  ;;  %v1616_v13 = vld [vmem:[#allocation2 + $0x2] sm:$0xff]  ;;  %v1622_v18 = vld [vmem:[#allocation2 + $0xa] sm:$0xff]  ;;  %v1624_v20 = vld [vmem:[#allocation2 + $0x1a] sm:$0xff] }
  0xe9   : > { %293 = vrot.lane.b32.xlu1 %v288_v22, %s1329_s5  ;;  %305 = vrot.lane.b32.xlu0 %v301_v23, %s1330_s17  ;;  %v445_v2 = vmul.f32 %v443_v61, %v1582_v55  ;;  %v359_v17 = vmul.f32 %v358_v15, %v1616_v13  ;;  %v360_v22 = vmul.f32 %v358_v15, %v1622_v18  ;;  %v1630_v25 = vld [vmem:[#allocation2 + $0x22] sm:$0xff]  ;;  %v372_v31 = vstv %s1035_s4  ;;  %s1710_s4 = sld [smem:[#allocation7 + $0x21]] }
  0xea   : > { %v1558_v38 = vld [vmem:[#allocation2 + $0x30] sm:$0xff]  ;;  %v1560_v40 = vld [vmem:[#allocation2 + $0x38] sm:$0xff]  ;;  %v466_v23 = vmul.f32 %v465_v21, %v1624_v20  ;;  %v282_v61 = vstv %s281_s27  ;;  %s1730_s27 = sld [smem:[#allocation8 + $0x14]] }
  0xeb   : > { %v501_v43 = vmul.f32 %v500_v39, %v1558_v38  ;;  %v502_v44 = vmul.f32 %v500_v39, %v1560_v40  ;;  %v515_v49 = vmul.f32 %v514_v45, %v1558_v38  ;;  %v516_v50 = vmul.f32 %v514_v45, %v1560_v40  ;;  %v1596_v0 = vld [vmem:[#allocation2 + $0x31] sm:$0xff]  ;;  %v1602_v4 = vld [vmem:[#allocation2 + $0x39] sm:$0xff] }
  0xec   : > { %v537_v3 = vmul.f32 %v536_v1, %v1596_v0  ;;  %v538_v6 = vmul.f32 %v536_v1, %v1602_v4  ;;  %v551_v7 = vmul.f32 %v550_v5, %v1596_v0  ;;  %v552_v10 = vmul.f32 %v550_v5, %v1602_v4  ;;  %v1644_v39 = vld [vmem:[#allocation2 + $0x32] sm:$0xff] }
  0xed   : > { %307 = vrot.lane.b32.xlu1 %v302_v26, %s1330_s17  ;;  %327 = vrot.lane.b32.xlu0 %v323_v27, %s1329_s5  ;;  %v657_v26 = vstv %s1059_s28  ;;  %v467_v27 = vmul.f32 %v465_v21, %v1630_v25  ;;  %v586_v45 = vstv %s1053_s19  ;;  %s1701_s28 = sld [smem:[#allocation7 + $0x18]] }
  0xee   : > { %v1570_v46 = vld [vmem:[#allocation2 + $0x48] sm:$0xff]  ;;  %v1572_v48 = vld [vmem:[#allocation2 + $0x50] sm:$0xff]  ;;  %s1720_s19 = sld [smem:[#allocation8 + $0x8]] }
  0xef   : > { %v608_v51 = vmul.f32 %v607_v47, %v1570_v46  ;;  %v609_v52 = vmul.f32 %v607_v47, %v1572_v48  ;;  %v622_v59 = vmul.f32 %v621_v58, %v1570_v46  ;;  %v623_v60 = vmul.f32 %v621_v58, %v1572_v48  ;;  %v1608_v8 = vld [vmem:[#allocation2 + $0x49] sm:$0xff]  ;;  %v1614_v12 = vld [vmem:[#allocation2 + $0x51] sm:$0xff] }
  0xf0   : > { %v644_v11 = vmul.f32 %v643_v9, %v1608_v8  ;;  %v645_v16 = vmul.f32 %v643_v9, %v1614_v12  ;;  %v658_v29 = vmul.f32 %v657_v26, %v1608_v8 }
  0xf1   : > { %329 = vrot.lane.b32.xlu1 %v324_v33, %s1329_s5  ;;  %341 = vrot.lane.b32.xlu0 %v337_v34, %s1330_s17  ;;  %v659_v33 = vmul.f32 %v657_v26, %v1614_v12  ;;  %v373_v34 = vmul.f32 %v372_v31, %v1616_v13 }
  0xf5   : > { %398 = vrot.lane.b32.xlu1 %v394_v35, %s1329_s5  ;;  %400 = vrot.lane.b32.xlu0 %v395_v36, %s1329_s5  ;;  %v479_v35 = vstv %s1044_s11  ;;  %v374_v36 = vmul.f32 %v372_v31, %v1622_v18  ;;  %s1712_s11 = sld [smem:[#allocation8]] }
  0xf6   : > { %v480_v37 = vmul.f32 %v479_v35, %v1624_v20 }
  0xf9   : > { %412 = vrot.lane.b32.xlu1 %v408_v41, %s1330_s17  ;;  %414 = vrot.lane.b32.xlu0 %v409_v42, %s1330_s17  ;;  %v572_v41 = vstv %s1052_s10  ;;  %v481_v42 = vmul.f32 %v479_v35, %v1630_v25  ;;  %s1718_s10 = sld [smem:[#allocation8 + $0x4]] }
  0xfd   : > { %505 = vrot.lane.b32.xlu1 %v501_v43, %s1329_s5  ;;  %507 = vrot.lane.b32.xlu0 %v502_v44, %s1329_s5  ;;  %v573_v43 = vmul.f32 %v572_v41, %v1644_v39  ;;  %v1650_v44 = vld [vmem:[#allocation2 + $0x3a] sm:$0xff] }
  0xfe   : > { %v574_v47 = vmul.f32 %v572_v41, %v1650_v44 }
 0x101   : > { %519 = vrot.lane.b32.xlu1 %v515_v49, %s1330_s17  ;;  %521 = vrot.lane.b32.xlu0 %v516_v50, %s1330_s17  ;;  %v587_v49 = vmul.f32 %v586_v45, %v1644_v39  ;;  %v1656_v50 = vld [vmem:[#allocation2 + $0x4a] sm:$0xff] }
 0x105   : > { %612 = vrot.lane.b32.xlu1 %v608_v51, %s1329_s5  ;;  %614 = vrot.lane.b32.xlu0 %v609_v52, %s1329_s5  ;;  %v679_v51 = vstv %s1061_s20  ;;  %v588_v52 = vmul.f32 %v586_v45, %v1650_v44  ;;  %s1723_s20 = sld [smem:[#allocation8 + $0xc]] }
 0x106   : > { %v680_v54 = vmul.f32 %v679_v51, %v1656_v50 }
 0x109   : > { %434 = vrot.lane.b32.xlu1 %v430_v56, %s1329_s5  ;;  %436 = vrot.lane.b32.xlu0 %v431_v57, %s1329_s5  ;;  %v1662_v56 = vld [vmem:[#allocation2 + $0x52] sm:$0xff]  ;;  %v693_v57 = vstv %s1062_s22  ;;  %s1725_s22 = sld [smem:[#allocation8 + $0x10]] }
 0x10a   : > { %v681_v58 = vmul.f32 %v679_v51, %v1662_v56 }
 0x10d   : > { %626 = vrot.lane.b32.xlu1 %v622_v59, %s1330_s17  ;;  %628 = vrot.lane.b32.xlu0 %v623_v60, %s1330_s17  ;;  %v694_v59 = vmul.f32 %v693_v57, %v1656_v50  ;;  %v695_v60 = vmul.f32 %v693_v57, %v1662_v56 }
 0x111   : > { %343 = vrot.lane.b32.xlu1 %v338_v62, %s1330_s17  ;;  %448 = vrot.lane.b32.xlu0 %v444_v63, %s1330_s17  ;;  %v283_v62 = vmul.f32 %v282_v61, %v1519_v14 }
 0x115   : > { %450 = vrot.lane.b32.xlu1 %v445_v2, %s1330_s17  ;;  %541 = vrot.lane.b32.xlu0 %v537_v3, %s1329_s5  ;;  %v316_v2 = vstv %s1030_s29  ;;  %v284_v3 = vmul.f32 %v282_v61, %v1528_v19  ;;  %s1732_s29 = sld [smem:[#allocation8 + $0x18]] }
 0x116   : > { %v318_v21 = vmul.f32 %v316_v2, %v1541_v28 }
 0x119   : > { %543 = vrot.lane.b32.xlu1 %v538_v6, %s1329_s5  ;;  %555 = vrot.lane.b32.xlu0 %v551_v7, %s1330_s17 }
 0x11d   : > { %557 = vrot.lane.b32.xlu1 %v552_v10, %s1330_s17  ;;  %648 = vrot.lane.b32.xlu0 %v644_v11, %s1329_s5  ;;  %v317_v10 = vmul.f32 %v316_v2, %v1534_v24 }
 0x121   : > { %650 = vrot.lane.b32.xlu1 %v645_v16, %s1329_s5  ;;  %363 = vrot.lane.b32.xlu0 %v359_v17, %s1329_s5 }
 0x125   : > { %365 = vrot.lane.b32.xlu1 %v360_v22, %s1329_s5  ;;  %470 = vrot.lane.b32.xlu0 %v466_v23, %s1329_s5  ;;  %v352_v22 = vstv %s1673_s6  ;;  %s1734_s6 = sld [smem:[#allocation8 + $0x1c]] }
 0x129   : > { %472 = vrot.lane.b32.xlu1 %v467_v27, %s1329_s5  ;;  %662 = vrot.lane.b32.xlu0 %v658_v29, %s1330_s17 }
 0x12d   : > { %664 = vrot.lane.b32.xlu1 %v659_v33, %s1330_s17  ;;  %377 = vrot.lane.b32.xlu0 %v373_v34, %s1330_s17  ;;  %v353_v33 = vmul.f32 %v352_v22, %v1616_v13 }
 0x131   : > { %379 = vrot.lane.b32.xlu1 %v374_v36, %s1330_s17  ;;  %484 = vrot.lane.b32.xlu0 %v480_v37, %s1330_s17 }
 0x135   : > { %486 = vrot.lane.b32.xlu1 %v481_v42, %s1330_s17  ;;  %577 = vrot.lane.b32.xlu0 %v573_v43, %s1329_s5 }
 0x139   : > { %579 = vrot.lane.b32.xlu1 %v574_v47, %s1329_s5  ;;  %591 = vrot.lane.b32.xlu0 %v587_v49, %s1330_s17 }
 0x13d   : > { %593 = vrot.lane.b32.xlu1 %v588_v52, %s1330_s17  ;;  %684 = vrot.lane.b32.xlu0 %v680_v54, %s1329_s5  ;;  %v496_v52 = vstv %s1045_s8  ;;  %s1743_s8 = sld [smem:[#allocation8 + $0x9]] }
 0x141   : > { %686 = vrot.lane.b32.xlu1 %v681_v58, %s1329_s5  ;;  %698 = vrot.lane.b32.xlu0 %v694_v59, %s1330_s17  ;;  %s1036_s5 = sld [smem:[#allocation7 + $0x9]]  ;;  %v497_v59 = vmul.f32 %v496_v52, %v1558_v38  ;;  %v603_v38 = vstv %s1054_s23 }
 0x142   : > { %s1748_s23 = sld [smem:[#allocation8 + $0x11]] }
 0x145   : > { %700 = vrot.lane.b32.xlu1 %v695_v60, %s1330_s17  ;;  %s1039_s17 = sld [smem:[#allocation7 + $0xc]]  ;;  %v530_v60 = vstv %s1048_s9 }
 0x146   : > { %s1745_s9 = sld [smem:[#allocation8 + $0xd]] }
 0x147   : > { %v389_v27 = vstv %s1036_s5  ;;  %s1737_s5 = sld [smem:[#allocation8 + $0x1]] }
 0x148   : > { %v391_v24 = vmul.f32 %v389_v27, %v1548_v32  ;;  %v390_v28 = vmul.f32 %v389_v27, %v1546_v30  ;;  %v498_v30 = vmul.f32 %v496_v52, %v1560_v40  ;;  %v459_v27 = vstv %s1694_s7  ;;  %s1754_s7 = sld [smem:[#allocation8 + $0x19]] }
 0x14b   : > { %v423_v41 = vstv %s1039_s17  ;;  %s1739_s17 = sld [smem:[#allocation8 + $0x5]] }
 0x14c   : > { %v424_v51 = vmul.f32 %v423_v41, %v1580_v53  ;;  %v425_v13 = vmul.f32 %v423_v41, %v1582_v55  ;;  %v531_v53 = vmul.f32 %v530_v60, %v1596_v0  ;;  %v532_v55 = vmul.f32 %v530_v60, %v1602_v4 }
 0x157   : > { %v292_v63 = vpop.permute.xlu0 %291 }
 0x158   : > { %v297_v1 = vadd.f32 %v292_v63, %v283_v62 }
 0x15b   : > { %v294_v5 = vpop.permute.xlu1 %293  ;;  %v306_v6 = vpop.permute.xlu0 %305 }
 0x15c   : > { %v298_v7 = vadd.f32 %v294_v5, %v284_v3  ;;  %v311_v9 = vadd.f32 %v306_v6, %v297_v1 }
 0x15e   : > { %v319_v11 = vadd.f32 %v317_v10, %v311_v9 }
 0x15f   : > { %v308_v15 = vpop.permute.xlu1 %307  ;;  %v328_v16 = vpop.permute.xlu0 %327 }
 0x160   : > { %v312_v14 = vadd.f32 %v308_v15, %v298_v7  ;;  %v333_v17 = vadd.f32 %v328_v16, %v319_v11  ;;  %v604_v11 = vmul.f32 %v603_v38, %v1570_v46  ;;  %v605_v15 = vmul.f32 %v603_v38, %v1572_v48 }
 0x161   : > { %v637_v16 = vstv %s1057_s26  ;;  %s1750_s26 = sld [smem:[#allocation8 + $0x15]]  ;;  %v832_v38 = vstv %s1730_s27 }
 0x162   : > { %v320_v23 = vadd.f32 %v318_v21, %v312_v14  ;;  %s1892_s27 = sld [smem:[#allocation8 + $0x1f]] }
 0x163   : > { %v330_v26 = vpop.permute.xlu1 %329  ;;  %v342_v19 = vpop.permute.xlu0 %341 }
 0x164   : > { %v1679_v29 = vadd.f32 %v330_v26, %v320_v23  ;;  %v347_v31 = vadd.f32 %v342_v19, %v333_v17  ;;  %v638_v26 = vmul.f32 %v637_v16, %v1608_v8  ;;  %v639_v19 = vmul.f32 %v637_v16, %v1614_v12 }
 0x165   : > { %v460_v8 = vmul.f32 %v459_v27, %v1624_v20  ;;  %v566_v20 = vstv %s1701_s28  ;;  %s1756_s28 = sld [smem:[#allocation8 + $0x1d]] }
 0x166   : > { %v1685_v34 = vadd.f32 %v353_v33, %v347_v31 }
 0x167   : > { %v399_v35 = vpop.permute.xlu1 %398  ;;  %v401_v36 = vpop.permute.xlu0 %400 }
 0x168   : > { %v405_v37 = vadd.f32 %v401_v36, %v391_v24  ;;  %v404_v42 = vadd.f32 %v399_v35, %v390_v28  ;;  %v354_v28 = vmul.f32 %v352_v22, %v1622_v18  ;;  %v461_v18 = vmul.f32 %v459_v27, %v1630_v25 }
 0x169   : > { %v861_v27 = vstv %s1754_s7 }
 0x16b   : > { %v413_v43 = vpop.permute.xlu1 %412  ;;  %v415_v45 = vpop.permute.xlu0 %414 }
 0x16c   : > { %v418_v47 = vadd.f32 %v413_v43, %v404_v42  ;;  %v419_v49 = vadd.f32 %v415_v45, %v405_v37 }
 0x16e   : > { %v426_v32 = vadd.f32 %v424_v51, %v418_v47  ;;  %v427_v54 = vadd.f32 %v425_v13, %v419_v49  ;;  %v567_v13 = vmul.f32 %v566_v20, %v1644_v39 }
 0x16f   : > { %v506_v57 = vpop.permute.xlu1 %505  ;;  %v508_v58 = vpop.permute.xlu0 %507 }
 0x170   : > { %v511_v61 = vadd.f32 %v506_v57, %v497_v59  ;;  %v512_v62 = vadd.f32 %v508_v58, %v498_v30  ;;  %v568_v58 = vmul.f32 %v566_v20, %v1650_v44 }
 0x173   : > { %v520_v63 = vpop.permute.xlu1 %519  ;;  %v522_v1 = vpop.permute.xlu0 %521 }
 0x174   : > { %v525_v2 = vadd.f32 %v520_v63, %v511_v61  ;;  %v526_v3 = vadd.f32 %v522_v1, %v512_v62  ;;  %v673_v61 = vstv %s1710_s4  ;;  %s1776_s4 = sld [smem:[#allocation8 + $0x1e]] }
 0x176   : > { %v533_v5 = vadd.f32 %v531_v53, %v525_v2  ;;  %v534_v6 = vadd.f32 %v532_v55, %v526_v3  ;;  %v674_v2 = vmul.f32 %v673_v61, %v1656_v50  ;;  %v707_v53 = vstv %s1712_s11  ;;  %s1820_s11 = sld [smem:[#allocation8 + $0x3]] }
 0x177   : > { %v613_v7 = vpop.permute.xlu1 %612  ;;  %v615_v9 = vpop.permute.xlu0 %614  ;;  %v732_v55 = vstv %s1718_s10  ;;  %s1830_s10 = sld [smem:[#allocation8 + $0x7]] }
 0x178   : > { %v618_v14 = vadd.f32 %v613_v7, %v604_v11  ;;  %v619_v0 = vadd.f32 %v615_v9, %v605_v15  ;;  %v782_v7 = vstv %s1723_s20  ;;  %v807_v9 = vstv %s1725_s22  ;;  %s1877_s20 = sld [smem:[#allocation8 + $0x17]] }
 0x179   : > { %s1882_s22 = sld [smem:[#allocation8 + $0x1b]] }
 0x17b   : > { %v435_v40 = vpop.permute.xlu1 %434  ;;  %v437_v10 = vpop.permute.xlu0 %436 }
 0x17c   : > { %v440_v31 = vadd.f32 %v435_v40, %v426_v32  ;;  %v441_v12 = vadd.f32 %v437_v10, %v427_v54  ;;  %v857_v40 = vstv %s1732_s29  ;;  %v882_v10 = vstv %s1734_s6 }
 0x17f   : > { %v627_v4 = vpop.permute.xlu1 %626  ;;  %v629_v17 = vpop.permute.xlu0 %628 }
 0x180   : > { %v632_v21 = vadd.f32 %v627_v4, %v618_v14  ;;  %v633_v23 = vadd.f32 %v629_v17, %v619_v0  ;;  %v711_v14 = vstv %s1737_s5  ;;  %v736_v0 = vstv %s1739_s17 }
 0x181   : > { %v761_v4 = vstv %s1743_s8 }
 0x182   : > { %v640_v33 = vadd.f32 %v638_v26, %v632_v21  ;;  %v1703_v46 = vadd.f32 %v639_v19, %v633_v23  ;;  %v786_v21 = vstv %s1745_s9  ;;  %v811_v23 = vstv %s1748_s23 }
 0x183   : > { %v344_v48 = vpop.permute.xlu1 %343  ;;  %v449_v24 = vpop.permute.xlu0 %448  ;;  %v836_v26 = vstv %s1750_s26 }
 0x184   : > { %v348_v35 = vadd.f32 %v344_v48, %v1679_v29  ;;  %v454_v36 = vadd.f32 %v449_v24, %v440_v31  ;;  %v886_v31 = vstv %s1756_s28  ;;  %v742_v48 = vstv %s1760_s1 }
 0x185   : > { %v767_v24 = vstv %s1762_s2  ;;  %s1114_s2 = sshll.u32 %s1375_s16, 11 }
 0x186   : > { %v1714_v37 = vadd.f32 %v354_v28, %v348_v35  ;;  %v1716_v41 = vadd.f32 %v460_v8, %v454_v36  ;;  %v792_v28 = vstv %s1764_s21  ;;  %v817_v8 = vstv %s1767_s14  ;;  %s1966_s16 = scalar_lea.hbm %s2030_s3, %s1114_s2 }
 0x187   : > { %v451_v42 = vpop.permute.xlu1 %450  ;;  %v542_v29 = vpop.permute.xlu0 %541 }
 0x188   : > { %v455_v43 = vadd.f32 %v451_v42, %v441_v12  ;;  %v547_v22 = vadd.f32 %v542_v29, %v533_v5  ;;  %v675_v5 = vmul.f32 %v673_v61, %v1662_v56  ;;  %v842_v12 = vstv %s1769_s13 }
 0x189   : > { %v867_v42 = vstv %s1771_s18  ;;  %s907_s18 = scalar_lea.sflag [#allocation5], %s1485_s30 }
 0x18a   : > { %v1728_v45 = vadd.f32 %v461_v18, %v455_v43  ;;  %v892_v18 = vstv %s1776_s4 }
 0x18b   : > { %v544_v47 = vpop.permute.xlu1 %543  ;;  %v556_v49 = vpop.permute.xlu0 %555 }
 0x18c   : > { %v561_v51 = vadd.f32 %v556_v49, %v547_v22  ;;  %v548_v25 = vadd.f32 %v544_v47, %v534_v6  ;;  %v757_v6 = vstv %s1720_s19  ;;  %s1840_s19 = sld [smem:[#allocation8 + $0xb]] }
 0x18e   : > { %v1741_v52 = vadd.f32 %v567_v13, %v561_v51 }
 0x18f   : > { %v558_v32 = vpop.permute.xlu1 %557  ;;  %v649_v54 = vpop.permute.xlu0 %648 }
 0x190   : > { %v562_v57 = vadd.f32 %v558_v32, %v548_v25  ;;  %v654_v62 = vadd.f32 %v649_v54, %v640_v33 }
 0x192   : > { %v1752_v39 = vadd.f32 %v568_v58, %v562_v57 }
 0x193   : > { %v651_v59 = vpop.permute.xlu1 %650  ;;  %v364_v30 = vpop.permute.xlu0 %363 }
 0x194   : > { %v655_v50 = vadd.f32 %v651_v59, %v1703_v46  ;;  %v369_v15 = vadd.f32 %v364_v30, %v1685_v34  ;;  %v717_v34 = vstv %s1758_s0  ;;  %s1027_s0 = sshll.u32 %s1485_s30, 7 }
 0x195   : > { %s1933_s1 = scalar_lea.vmem [#allocation10], %s1027_s0 }
 0x196   : > { %s920_s13 = sshll.u32 %s1933_s1, 4  ;;  %s1968_s13 = int_to_ptr.vmem [resolvable:$true] %s920_s13 }
 0x197   : > { %v366_v60 = vpop.permute.xlu1 %365  ;;  %v471_v44 = vpop.permute.xlu0 %470  ;;  %s1248_s21 = scalar_lea.vmem %s1968_s13, 2048 }
 0x198   : > { %v370_v33 = vadd.f32 %v366_v60, %v1714_v37  ;;  %v476_v46 = vadd.f32 %v471_v44, %v1716_v41  ;;  %p1249_p9 = scmp.ne.s32.totalorder %s1968_s13, %s1248_s21 }
 0x19a   : > { %p1250_p5 = pnand %p1249_p9, %p2068_p1 }
 0x19b   : > { %v473_v63 = vpop.permute.xlu1 %472  ;;  %v663_v1 = vpop.permute.xlu0 %662 }
 0x19c   : > { %v668_v3 = vadd.f32 %v663_v1, %v654_v62  ;;  %v477_v37 = vadd.f32 %v473_v63, %v1728_v45  ;;  %p1251_p2 = pneg %p1250_p5 }
 0x19e   : > { %v1786_v11 = vadd.f32 %v674_v2, %v668_v3 }
 0x19f   : > { %v665_v56 = vpop.permute.xlu1 %664  ;;  %v378_v16 = vpop.permute.xlu0 %377 }
 0x1a0   : > { %v669_v17 = vadd.f32 %v665_v56, %v655_v50  ;;  %v383_v19 = vadd.f32 %v378_v16, %v369_v15 }
 0x1a2   : > { %v1807_v20 = vadd.f32 %v675_v5, %v669_v17  ;;  %v708_v41 = vmul.f32 %v707_v53, %v383_v19  ;;  %v733_v22 = vmul.f32 %v732_v55, %v383_v19  ;;  %v758_v47 = vmul.f32 %v757_v6, %v383_v19 }
 0x1a3   : > { %v380_v35 = vpop.permute.xlu1 %379  ;;  %v485_v36 = vpop.permute.xlu0 %484  ;;  %v783_v49 = vmul.f32 %v782_v7, %v383_v19  ;;  %v808_v51 = vmul.f32 %v807_v9, %v383_v19  ;;  %v833_v13 = vmul.f32 %v832_v38, %v383_v19  ;;  %v858_v25 = vmul.f32 %v857_v40, %v383_v19 }
 0x1a4   : > { %v384_v29 = vadd.f32 %v380_v35, %v370_v33  ;;  %v490_v43 = vadd.f32 %v485_v36, %v476_v46  ;;  %v883_v45 = vmul.f32 %v882_v10, %v383_v19 }
 0x1a6   : > { %v709_v32 = vmul.f32 %v707_v53, %v384_v29  ;;  %v734_v54 = vmul.f32 %v732_v55, %v384_v29  ;;  %v759_v57 = vmul.f32 %v757_v6, %v384_v29  ;;  %v712_v30 = vmul.f32 %v711_v14, %v490_v43 }
 0x1a7   : > { %v487_v58 = vpop.permute.xlu1 %486  ;;  %v578_v59 = vpop.permute.xlu0 %577  ;;  %v737_v60 = vmul.f32 %v736_v0, %v490_v43  ;;  %v762_v44 = vmul.f32 %v761_v4, %v490_v43  ;;  %v787_v61 = vmul.f32 %v786_v21, %v490_v43  ;;  %v812_v62 = vmul.f32 %v811_v23, %v490_v43 }
 0x1a8   : > { %v837_v63 = vmul.f32 %v836_v26, %v490_v43  ;;  %v862_v1 = vmul.f32 %v861_v27, %v490_v43  ;;  %v887_v2 = vmul.f32 %v886_v31, %v490_v43  ;;  %v714_v3 = vadd.f32 %v712_v30, %v708_v41 }
 0x1a9   : > { %v739_v53 = vadd.f32 %v737_v60, %v733_v22  ;;  %v764_v55 = vadd.f32 %v762_v44, %v758_v47  ;;  %v789_v5 = vadd.f32 %v787_v61, %v783_v49  ;;  %v814_v6 = vadd.f32 %v812_v62, %v808_v51 }
 0x1aa   : > { %v839_v50 = vadd.f32 %v837_v63, %v833_v13  ;;  %v864_v15 = vadd.f32 %v862_v1, %v858_v25  ;;  %v889_v56 = vadd.f32 %v887_v2, %v883_v45  ;;  %v784_v19 = vmul.f32 %v782_v7, %v384_v29 }
 0x1ab   : > { %v580_v16 = vpop.permute.xlu1 %579  ;;  %v592_v17 = vpop.permute.xlu0 %591  ;;  %v809_v33 = vmul.f32 %v807_v9, %v384_v29  ;;  %v834_v46 = vmul.f32 %v832_v38, %v384_v29  ;;  %v491_v35 = vadd.f32 %v487_v58, %v477_v37  ;;  %v859_v36 = vmul.f32 %v857_v40, %v384_v29 }
 0x1ac   : > { %v884_v43 = vmul.f32 %v882_v10, %v384_v29  ;;  %v583_v41 = vadd.f32 %v578_v59, %v1741_v52  ;;  %v584_v22 = vadd.f32 %v580_v16, %v1752_v39  ;;  %v748_v13 = vstv %s1830_s10 }
 0x1ad   : > { %v713_v47 = vmul.f32 %v711_v14, %v491_v35  ;;  %v738_v49 = vmul.f32 %v736_v0, %v491_v35  ;;  %v763_v51 = vmul.f32 %v761_v4, %v491_v35  ;;  %v788_v7 = vmul.f32 %v786_v21, %v491_v35 }
 0x1ae   : > { %v813_v9 = vmul.f32 %v811_v23, %v491_v35  ;;  %v838_v38 = vmul.f32 %v836_v26, %v491_v35  ;;  %v863_v40 = vmul.f32 %v861_v27, %v491_v35  ;;  %v888_v52 = vmul.f32 %v886_v31, %v491_v35 }
 0x1af   : > { %v715_v39 = vadd.f32 %v713_v47, %v709_v32  ;;  %v740_v10 = vadd.f32 %v738_v49, %v734_v54  ;;  %v765_v14 = vadd.f32 %v763_v51, %v759_v57  ;;  %v790_v0 = vadd.f32 %v788_v7, %v784_v19  ;;  %v594_v4 = vpop.permute.xlu1 %593  ;;  %v685_v21 = vpop.permute.xlu0 %684 }
 0x1b0   : > { %v815_v29 = vadd.f32 %v813_v9, %v809_v33  ;;  %v840_v23 = vadd.f32 %v838_v38, %v834_v46  ;;  %v865_v26 = vadd.f32 %v863_v40, %v859_v36  ;;  %v890_v37 = vadd.f32 %v888_v52, %v884_v43 }
 0x1b1   : > { %v597_v27 = vadd.f32 %v592_v17, %v583_v41  ;;  %v723_v31 = vstv %s1820_s11  ;;  %v773_v25 = vstv %s1840_s19  ;;  %v598_v45 = vadd.f32 %v594_v4, %v584_v22 }
 0x1b2   : > { %v690_v32 = vadd.f32 %v685_v21, %v1786_v11  ;;  %v798_v54 = vstv %s1842_s15  ;;  %v823_v57 = vstv %s1844_s25  ;;  %v873_v47 = vstv %s1882_s22  ;;  %s1331_s25 = smov [#allocation10]  }
 0x1b3   : > { %v718_v58 = vmul.f32 %v717_v34, %v597_v27  ;;  %v743_v59 = vmul.f32 %v742_v48, %v597_v27  ;;  %v768_v30 = vmul.f32 %v767_v24, %v597_v27  ;;  %v793_v60 = vmul.f32 %v792_v28, %v597_v27  ;;  %s1252_s29 = sshll.u32 %s1331_s25, 4  ;;  %s1253_s29 = int_to_ptr.vmem [resolvable:$false] %s1252_s29 }
 0x1b4   : > { %v818_v11 = vmul.f32 %v817_v8, %v597_v27  ;;  %v843_v44 = vmul.f32 %v842_v12, %v597_v27  ;;  %v868_v61 = vmul.f32 %v867_v42, %v597_v27  ;;  %v893_v62 = vmul.f32 %v892_v18, %v597_v27  ;;  %s1254_s6 = scalar_lea.vmem %s1253_s29, 4096  ;;  %p1255_p8 = scmp.lt.s32.totalorder %s1968_s13, %s1253_s29 }
 0x1b5   : > { %v720_v63 = vadd.f32 %v718_v58, %v714_v3  ;;  %v745_v1 = vadd.f32 %v743_v59, %v739_v53  ;;  %v770_v2 = vadd.f32 %v768_v30, %v764_v55  ;;  %v795_v16 = vadd.f32 %v793_v60, %v789_v5  ;;  %v687_v5 = vpop.permute.xlu1 %686  ;;  %p1256_p10 = scmp.lt.s32.totalorder %s1254_s6, %s1248_s21 }
 0x1b6   : > { %v820_v17 = vadd.f32 %v818_v11, %v814_v6  ;;  %v845_v19 = vadd.f32 %v843_v44, %v839_v50  ;;  %v870_v33 = vadd.f32 %v868_v61, %v864_v15  ;;  %v895_v46 = vadd.f32 %v893_v62, %v889_v56 }
 0x1b7   : > { %v719_v35 = vmul.f32 %v717_v34, %v598_v45  ;;  %v744_v36 = vmul.f32 %v742_v48, %v598_v45  ;;  %v769_v43 = vmul.f32 %v767_v24, %v598_v45  ;;  %v794_v41 = vmul.f32 %v792_v28, %v598_v45  ;;  %v699_v34 = vpop.permute.xlu0 %698  ;;  %p1257_p4 = por %p1256_p10, %p1255_p8 }
 0x1b8   : > { %v819_v22 = vmul.f32 %v817_v8, %v598_v45  ;;  %v844_v3 = vmul.f32 %v842_v12, %v598_v45  ;;  %v869_v53 = vmul.f32 %v867_v42, %v598_v45  ;;  %v894_v55 = vmul.f32 %v892_v18, %v598_v45 }
 0x1b9   : > { %v721_v48 = vadd.f32 %v719_v35, %v715_v39  ;;  %v746_v24 = vadd.f32 %v744_v36, %v740_v10  ;;  %v771_v6 = vadd.f32 %v769_v43, %v765_v14  ;;  %v796_v28 = vadd.f32 %v794_v41, %v790_v0  ;;  %v701_v14 = vpop.permute.xlu1 %700  ;;  %p1258_p12 = pnand %p1257_p4, %p1251_p2 }
 0x1ba   : > { %v821_v8 = vadd.f32 %v819_v22, %v815_v29  ;;  %v846_v50 = vadd.f32 %v844_v3, %v840_v23  ;;  %v871_v15 = vadd.f32 %v869_v53, %v865_v26  ;;  %v896_v12 = vadd.f32 %v894_v55, %v890_v37 }
 0x1bb   : > { %v848_v56 = vstv %s1877_s20  ;;  %v898_v42 = vstv %s1892_s27  ;;  %v704_v18 = vadd.f32 %v699_v34, %v690_v32  ;;  %v691_v49 = vadd.f32 %v687_v5, %v1807_v20 }
 0x1bd   : > { %v724_v51 = vmul.f32 %v723_v31, %v704_v18  ;;  %v749_v7 = vmul.f32 %v748_v13, %v704_v18  ;;  %v774_v9 = vmul.f32 %v773_v25, %v704_v18  ;;  %v799_v38 = vmul.f32 %v798_v54, %v704_v18 }
 0x1be   : > { %v824_v40 = vmul.f32 %v823_v57, %v704_v18  ;;  %v849_v52 = vmul.f32 %v848_v56, %v704_v18  ;;  %v874_v39 = vmul.f32 %v873_v47, %v704_v18  ;;  %v899_v10 = vmul.f32 %v898_v42, %v704_v18 }
 0x1bf   : > { %v726_v0 = vadd.f32 %v724_v51, %v720_v63  ;;  %v751_v4 = vadd.f32 %v749_v7, %v745_v1  ;;  %v776_v21 = vadd.f32 %v774_v9, %v770_v2  ;;  %v801_v20 = vadd.f32 %v799_v38, %v795_v16 }
 0x1c0   : > { %v826_v29 = vadd.f32 %v824_v40, %v820_v17  ;;  %v851_v23 = vadd.f32 %v849_v52, %v845_v19  ;;  %v876_v26 = vadd.f32 %v874_v39, %v870_v33  ;;  %v901_v37 = vadd.f32 %v899_v10, %v895_v46 }
 0x1c1   : > { %729 = vst.msk [vmem:[%s1933_s1] sm:$0xff] %vm728_vm3, %v726_v0  ;;  %1070 = vst.msk [vmem:[%s1933_s1 + $0x10] sm:$0xff] %vm728_vm3, %v751_v4  ;;  %v705_v27 = vadd.f32 %v701_v14, %v691_v49 }
 0x1c2   : > { %1076 = vst.msk [vmem:[%s1933_s1 + $0x20] sm:$0xff] %vm728_vm3, %v776_v21  ;;  %1082 = vst.msk [vmem:[%s1933_s1 + $0x30] sm:$0xff] %vm728_vm3, %v801_v20 }
 0x1c3   : > { %1088 = vst.msk [vmem:[%s1933_s1 + $0x40] sm:$0xff] %vm728_vm3, %v826_v29  ;;  %1094 = vst.msk [vmem:[%s1933_s1 + $0x50] sm:$0xff] %vm728_vm3, %v851_v23  ;;  %v725_v45 = vmul.f32 %v723_v31, %v705_v27  ;;  %v750_v32 = vmul.f32 %v748_v13, %v705_v27  ;;  %v775_v58 = vmul.f32 %v773_v25, %v705_v27 }
 0x1c4   : > { %1100 = vst.msk [vmem:[%s1933_s1 + $0x60] sm:$0xff] %vm728_vm3, %v876_v26  ;;  %1106 = vst.msk [vmem:[%s1933_s1 + $0x70] sm:$0xff] %vm728_vm3, %v901_v37  ;;  %v800_v59 = vmul.f32 %v798_v54, %v705_v27  ;;  %v825_v30 = vmul.f32 %v823_v57, %v705_v27  ;;  %v850_v60 = vmul.f32 %v848_v56, %v705_v27 }
 0x1c5   : > { %v875_v11 = vmul.f32 %v873_v47, %v705_v27  ;;  %v900_v44 = vmul.f32 %v898_v42, %v705_v27  ;;  %v727_v61 = vadd.f32 %v725_v45, %v721_v48  ;;  %v752_v31 = vadd.f32 %v750_v32, %v746_v24 }
 0x1c6   : > { %v777_v13 = vadd.f32 %v775_v58, %v771_v6  ;;  %v802_v25 = vadd.f32 %v800_v59, %v796_v28  ;;  %v827_v54 = vadd.f32 %v825_v30, %v821_v8  ;;  %v852_v57 = vadd.f32 %v850_v60, %v846_v50 }
 0x1c7   : > { %v877_v62 = vadd.f32 %v875_v11, %v871_v15  ;;  %v902_v63 = vadd.f32 %v900_v44, %v896_v12  ;;  %730 = vst.msk [vmem:[%s1933_s1 + $0x8] sm:$0xff] %vm728_vm3, %v727_v61  ;;  %1071 = vst.msk [vmem:[%s1933_s1 + $0x18] sm:$0xff] %vm728_vm3, %v752_v31 }
 0x1c8   : > { %1077 = vst.msk [vmem:[%s1933_s1 + $0x28] sm:$0xff] %vm728_vm3, %v777_v13  ;;  %1083 = vst.msk [vmem:[%s1933_s1 + $0x38] sm:$0xff] %vm728_vm3, %v802_v25 }
 0x1c9   : > { %1089 = vst.msk [vmem:[%s1933_s1 + $0x48] sm:$0xff] %vm728_vm3, %v827_v54  ;;  %1095 = vst.msk [vmem:[%s1933_s1 + $0x58] sm:$0xff] %vm728_vm3, %v852_v57 }
 0x1ca   : > { %1101 = vst.msk [vmem:[%s1933_s1 + $0x68] sm:$0xff] %vm728_vm3, %v877_v62  ;;  %1107 = vst.msk [vmem:[%s1933_s1 + $0x78] sm:$0xff] %vm728_vm3, %v902_v63 }
 0x1cb   : > { %1261 = shalt.err (!%p1258_p12)
}
 0x1cc   : > { %s1262_s5 = scalar_lea.hbm %s1966_s16, 2048  ;;  %s1266_s9 = scalar_lea.hbm %s2030_s3, 4096 }
 0x1cd   : > { %p1263_p11 = scmp.ne.s32.totalorder %s1966_s16, %s1262_s5  ;;  %p1267_p0 = scmp.lt.s32.totalorder %s1966_s16, %s2030_s3 }
 0x1ce   : > { %p1268_p7 = scmp.lt.s32.totalorder %s1266_s9, %s1262_s5 }
 0x1cf   : > { %p1264_p13 = pnand %p1263_p11, %p2068_p1 }
 0x1d0   : > { %p1269_p3 = por %p1268_p7, %p1267_p0 }
 0x1d1   : > { %p1265_p6 = pneg %p1264_p13 }
 0x1d3   : > { %p1270_p9 = pnand %p1269_p3, %p1265_p6 }
 0x1d5   : > { %1273 = shalt.err (!%p1270_p9)
}
 0x1d6   : > { %s1332_s7 = smov 128   ;;  %s1333_s28 = smov 8  }
 0x1d7   : > { %1125 = dma.vmem_to_hbm [thread:$0]  (%p2068_p1), %s1968_s13, 2048, %s1966_s16, %s907_s18, %s1332_s7, %s1332_s7, %s1333_s28  }
 0x1d8 PF: > { %s2069_s4 = sld [smem:[#allocation20_spill]]  ;;  %s935_s10 = sand.u32 1, %s1308_s12  }
 0x1d9   : > { %s2070_s11 = sld [smem:[#allocation17_spill]]  ;;  %s936_s19 = scalar_lea.sflag [#allocation5], %s935_s10 }
 0x1de   : > { %p2071_p5 = scmp.ne.s32.totalorder %s2069_s4, 0 }
 0x1df   : > { %p2072_p2 = scmp.ge.s32.totalorder %s2070_s11, 2 }
 0x1e1   : > { %p1139_p8 = pnand %p2072_p2, %p2071_p5 }
 0x1e3   : > { %p1140_p10 = pneg %p1139_p8 }
 0x1e5   : > { %1303 = dma.done.wait (%p1140_p10), %s936_s19, 2048  }
 0x1e6   : > { %1305 = vsyncadd (%p1140_p10), %s936_s19, 4294965248  ;;  %s2073_s15 = sld [smem:[#allocation18_spill]] }
 0x1e7   : > { %s2074_s12 = sld [smem:[#allocation15_spill]] }
 0x1e8   : > { %s2075_s13 = sld [smem:[#allocation16_spill]] }
 0x1e9   : > { %s2076_s14 = sld [smem:[#allocation19_spill]] }
 0x1ec   : > { %p18_p4 = scmp.ge.s32.totalorder %s2073_s15, 4  }
 0x1ee   :  { %20 = sbr.rel (!%p18_p4) target bundleno = 11 (0xb), region = 96 }
 0x1f3   :  { %941 = vsyncpa [#allocation4], 1 }
 0x1f4   :  { %943 = vsyncpa [#allocation4 + $0x1], 1 }
 0x1f5   :  { %944 = vsyncpa [#allocation5], 1 }
 0x1f6   :  { %946 = vsyncpa [#allocation5 + $0x1], 1 }
 0x1f7   :  { %947 = vsyncpa [#allocation6], 1 }
 0x1f8   :  { %949 = vsyncpa [#allocation6 + $0x1], 1 }
 0x1f9   :  { %950 = vsyncpa [#allocation9], 1 }

</bundles_post_ra>
